<compile_context>
chip_gen: v7x
topology: tpu7x:2x2x1
jax: 0.10.0
libtpu: 0.0.40
codegen_flags: <defaults>
</compile_context>

<pallas_src>
import functools

import jax
import jax.numpy as jnp
from jax import lax
from jax.experimental import pallas as pl
from jax.experimental.pallas import tpu as pltpu

EPS = 1e-5


def _compiler_params():
    return pltpu.CompilerParams(
        dimension_semantics=("parallel",),
        vmem_limit_bytes=32 * 1024 * 1024,
    )


# --------------------------------------------------------------------------- #
# Kernel 1: down conv (4x4, stride 2, pad 1) as ONE K-packed matmul per image.
# Output is lane-dense (Csub, Ho*Wo) bf16 + per-image BN partials [sum, sumsq].
# --------------------------------------------------------------------------- #
def _down_conv_stats_kernel(phases_ref, wd_ref, down_ref, stats_ref):
    # phases_ref: (1, 2, 2, Ho+1, Wo+1, Cin) bf16  stride-2 phase split of pad(x)
    # wd_ref:     (Csub, 16*Cin)             bf16  K-packed down weights
    # down_ref:   (1, Csub, Ho*Wo)           bf16  raw conv output (pre-BN)
    # stats_ref:  (1, Csub, 2)               f32   per-image [sum, sumsq]
    _, _, _, hp, wp, cin = phases_ref.shape
    ho, wo = hp - 1, wp - 1
    m = ho * wo

    taps = []
    for a in range(2):
        for b in range(2):
            ph = phases_ref[0, a, b]                       # (Ho+1, Wo+1, Cin)
            for th in range(2):
                for tw in range(2):
                    taps.append(ph[th:th + ho, tw:tw + wo, :].reshape(m, cin))
    t = jnp.concatenate(taps, axis=-1)                     # (M, 16*Cin) bf16

    # (Csub, K) contracted with (M, K) on K -> (Csub, M): channels on sublanes,
    # spatial on lanes (lane-dense store).
    acc = lax.dot_general(wd_ref[...], t, (((1,), (1,)), ((), ())),
                          preferred_element_type=jnp.float32)
    acc_bf = acc.astype(jnp.bfloat16)
    down_ref[0] = acc_bf

    # BN partials from the values actually stored (bf16-rounded).
    accr = acc_bf.astype(jnp.float32)
    s1 = jnp.sum(accr, axis=1, keepdims=True)
    s2 = jnp.sum(accr * accr, axis=1, keepdims=True)
    stats_ref[0] = jnp.concatenate([s1, s2], axis=1)


# --------------------------------------------------------------------------- #
# Kernel 2: fused down-BN affine + LeakyReLU(0.2), then ConvTranspose2d(4,2,1)
# via sub-pixel phase decomposition.  Neighbourhood taps are built with static
# lane shifts + a column mask (no padded scratch); one K=4*Csub matmul per
# output phase.  Emits raw bf16 phase outputs + per-image BN partials.
# --------------------------------------------------------------------------- #
def _up_conv_stats_kernel(down_ref, dsc_ref, dsh_ref, col_ref, wu_ref,
                          up_ref, ustats_ref, *, wo):
    # down_ref:  (1, Csub, M)       bf16  raw down conv output (M = Ho*Wo)
    # dsc/dsh:   (Csub, 1)          f32   folded down-BN scale / shift
    # col_ref:   (1, M)             i32   lane -> column index (j = lane % Wo)
    # wu_ref:    (4, Cup, 4*Csub)   bf16  per-output-phase K-packed weights
    # up_ref:    (1, 4, Cup, M)     bf16  raw transposed-conv phase outputs
    # ustats:    (1, Cup, 2)        f32   per-image [sum, sumsq]
    _, csub, m = down_ref.shape
    cup = wu_ref.shape[1]

    d = down_ref[0].astype(jnp.float32)                    # (Csub, M)
    act = d * dsc_ref[...] + dsh_ref[...]                  # fused BatchNorm
    act = jnp.where(act >= 0.0, act, 0.2 * act)            # LeakyReLU(0.2)
    act = act.astype(jnp.bfloat16)                         # cast ONCE

    col = col_ref[...]                                     # (1, M) int32

    def shifted(di, dj):
        # value at output lane (i, j) = act[:, i+di, j+dj], zero out of bounds.
        off = di * wo + dj
        if off > 0:
            v = jnp.concatenate(
                [act[:, off:], jnp.zeros((csub, off), act.dtype)], axis=1)
        elif off < 0:
            v = jnp.concatenate(
                [jnp.zeros((csub, -off), act.dtype), act[:, :off]], axis=1)
        else:
            v = act
        if dj != 0:
            ok = jnp.logical_and(col + dj >= 0, col + dj < wo)
            v = jnp.where(ok, v, jnp.zeros_like(v))
        return v

    shifts = {(di, dj): shifted(di, dj)
              for di in (-1, 0, 1) for dj in (-1, 0, 1)}

    s1 = jnp.zeros((cup, 1), jnp.float32)
    s2 = jnp.zeros((cup, 1), jnp.float32)
    for rh in range(2):
        for rw in range(2):
            t = jnp.concatenate(
                [shifts[(rh + a - 1, rw + b - 1)]
                 for a in range(2) for b in range(2)], axis=0)   # (4*Csub, M)
            acc = jnp.dot(wu_ref[rh * 2 + rw], t,
                          preferred_element_type=jnp.float32)    # (Cup, M)
            acc_bf = acc.astype(jnp.bfloat16)
            up_ref[0, rh * 2 + rw] = acc_bf
            accr = acc_bf.astype(jnp.float32)
            s1 = s1 + jnp.sum(accr, axis=1, keepdims=True)
            s2 = s2 + jnp.sum(accr * accr, axis=1, keepdims=True)
    ustats_ref[0] = jnp.concatenate([s1, s2], axis=1)


# --------------------------------------------------------------------------- #
# Wrapper
# --------------------------------------------------------------------------- #
def unet_skip_block_forward(x_nchw, params, eps=EPS):
    f32 = jnp.float32
    x_nchw = x_nchw.astype(f32)
    n, cin, h, w = x_nchw.shape
    assert h % 2 == 0 and w % 2 == 0
    ho, wo = h // 2, w // 2
    hp, wp = ho + 1, wo + 1
    m = ho * wo
    csub = params["down_w"].shape[0]
    cup = params["up_w"].shape[1]

    # ---- tiny XLA glue: pad + stride-2 phase split + bf16 cast (one fusion) --
    xp = jnp.pad(x_nchw, ((0, 0), (0, 0), (1, 1), (1, 1)))
    phases_d = (xp.reshape(n, cin, hp, 2, wp, 2)
                  .transpose(0, 3, 5, 2, 4, 1)
                  .astype(jnp.bfloat16))                   # (n, 2, 2, hp, wp, cin)

    col_ids = (jnp.arange(m, dtype=jnp.int32) % wo).reshape(1, m)

    # ---- K-packed weights (host/XLA side, negligible) ------------------------
    wd_f = params["down_w"].astype(f32)                    # (Csub, Cin, 4, 4)
    wd2 = jnp.concatenate(
        [wd_f[:, :, 2 * th + a, 2 * tw + b]                # (Csub, Cin)
         for a in range(2) for b in range(2)
         for th in range(2) for tw in range(2)],
        axis=1).astype(jnp.bfloat16)                       # (Csub, 16*Cin)

    wu_f = params["up_w"].astype(f32)                      # (Csub, Cup, 4, 4)
    wu2 = jnp.stack(
        [jnp.concatenate(
            [wu_f[:, :, 3 - rh - 2 * a, 3 - rw - 2 * b].T  # (Cup, Csub)
             for a in range(2) for b in range(2)], axis=1)
         for rh in range(2) for rw in range(2)],
        axis=0).astype(jnp.bfloat16)                       # (4, Cup, 4*Csub)

    # ---- pass 1: down conv + BN partials (grid over images, parallel) -------
    down_raw, d_stats = pl.pallas_call(
        _down_conv_stats_kernel,
        out_shape=(jax.ShapeDtypeStruct((n, csub, m), jnp.bfloat16),
                   jax.ShapeDtypeStruct((n, csub, 2), f32)),
        grid_spec=pltpu.PrefetchScalarGridSpec(
            num_scalar_prefetch=0,
            grid=(n,),
            in_specs=[
                pl.BlockSpec((1, 2, 2, hp, wp, cin),
                             lambda i: (i, 0, 0, 0, 0, 0)),
                pl.BlockSpec((csub, 16 * cin), lambda i: (0, 0)),
            ],
            out_specs=[
                pl.BlockSpec((1, csub, m), lambda i: (i, 0, 0)),
                pl.BlockSpec((1, csub, 2), lambda i: (i, 0, 0)),
            ],
        ),
        compiler_params=_compiler_params(),
    )(phases_d, wd2)

    # exact batch stats -> folded per-channel affine (tiny)
    cnt_d = float(n * ho * wo)
    tot_d = jnp.sum(d_stats, axis=0)                       # (Csub, 2)
    mean_d = tot_d[:, 0] / cnt_d
    var_d = jnp.maximum(tot_d[:, 1] / cnt_d - mean_d * mean_d, 0.0)
    d_scale = params["down_gamma"].astype(f32) * lax.rsqrt(var_d + eps)
    d_shift = params["down_beta"].astype(f32) - mean_d * d_scale
    d_scale = d_scale.reshape(csub, 1)
    d_shift = d_shift.reshape(csub, 1)

    # ---- pass 2: down BN + LeakyReLU fused with the up (transposed) conv ----
    up_raw, u_stats = pl.pallas_call(
        functools.partial(_up_conv_stats_kernel, wo=wo),
        out_shape=(jax.ShapeDtypeStruct((n, 4, cup, m), jnp.bfloat16),
                   jax.ShapeDtypeStruct((n, cup, 2), f32)),
        grid_spec=pltpu.PrefetchScalarGridSpec(
            num_scalar_prefetch=0,
            grid=(n,),
            in_specs=[
                pl.BlockSpec((1, csub, m), lambda i: (i, 0, 0)),
                pl.BlockSpec((csub, 1), lambda i: (0, 0)),
                pl.BlockSpec((csub, 1), lambda i: (0, 0)),
                pl.BlockSpec((1, m), lambda i: (0, 0)),
                pl.BlockSpec((4, cup, 4 * csub), lambda i: (0, 0, 0)),
            ],
            out_specs=[
                pl.BlockSpec((1, 4, cup, m), lambda i: (i, 0, 0, 0)),
                pl.BlockSpec((1, cup, 2), lambda i: (i, 0, 0)),
            ],
        ),
        compiler_params=_compiler_params(),
    )(down_raw, d_scale, d_shift, col_ids, wu2)

    cnt_u = float(n * h * w)
    tot_u = jnp.sum(u_stats, axis=0)                       # (Cup, 2)
    mean_u = tot_u[:, 0] / cnt_u
    var_u = jnp.maximum(tot_u[:, 1] / cnt_u - mean_u * mean_u, 0.0)
    u_scale = params["up_gamma"].astype(f32) * lax.rsqrt(var_u + eps)
    u_shift = params["up_beta"].astype(f32) - mean_u * u_scale

    # ---- epilogue: one small XLA fusion (per review) -------------------------
    # up BN affine + ReLU + sub-pixel phase interleave + skip concat.
    up = (up_raw.astype(f32) * u_scale[None, None, :, None]
          + u_shift[None, None, :, None])                  # (n, 4, Cup, M)
    up = jnp.maximum(up, 0.0)
    up = (up.reshape(n, 2, 2, cup, ho, wo)
            .transpose(0, 3, 4, 1, 5, 2)
            .reshape(n, cup, h, w))
    return jnp.concatenate([x_nchw, up], axis=1)


# --------------------------- pure-JAX reference ----------------------------- #
def _bn_ref(x, g, b, eps=EPS):
    mu = jnp.mean(x, axis=(0, 1, 2), keepdims=True)
    v = jnp.mean((x - mu) ** 2, axis=(0, 1, 2), keepdims=True)
    return (x - mu) * lax.rsqrt(v + eps) * g + b


def unet_skip_block_ref(x_nchw, params, eps=EPS):
    f32 = jnp.float32
    # mirror the kernel's bf16 MXU operands / bf16 intermediates (f32 accum)
    rb = lambda t: t.astype(jnp.bfloat16).astype(f32)
    x = jnp.transpose(x_nchw, (0, 2, 3, 1)).astype(f32)

    w_d = jnp.transpose(rb(params["down_w"]), (2, 3, 1, 0))          # HWIO
    d = lax.conv_general_dilated(
        rb(x), w_d, (2, 2), ((1, 1), (1, 1)),
        dimension_numbers=("NHWC", "HWIO", "NHWC"),
        precision=lax.Precision.HIGHEST)
    d = rb(d) + params["down_b"]          # kernel stores the raw conv in bf16
    d = _bn_ref(d, params["down_gamma"], params["down_beta"], eps)
    d = jnp.where(d >= 0.0, d, 0.2 * d)

    w_u = jnp.transpose(jnp.flip(rb(params["up_w"]), axis=(2, 3)), (2, 3, 0, 1))
    u = lax.conv_general_dilated(
        rb(d), w_u, (1, 1), ((2, 2), (2, 2)), lhs_dilation=(2, 2),
        dimension_numbers=("NHWC", "HWIO", "NHWC"),
        precision=lax.Precision.HIGHEST)
    u = rb(u) + params["up_b"]            # kernel stores the raw conv in bf16
    u = _bn_ref(u, params["up_gamma"], params["up_beta"], eps)
    u = jnp.maximum(u, 0.0)

    out = jnp.concatenate([x, u], axis=-1)
    return jnp.transpose(out, (0, 3, 1, 2))


# --------------------------------- main ------------------------------------ #
if __name__ == "__main__":
    # Module config: in_channels=4, sub_channels=8, out_channels=12, submodule=None
    N, CIN, H, W = 2, 4, 16, 16
    CSUB, COUT = 8, 12
    CUP = COUT - CIN

    key = jax.random.PRNGKey(0)
    ks = jax.random.split(key, 9)
    params = {
        # Conv2d(in=4, out=8, k=4): weight (Cout, Cin, Kh, Kw), bias (Cout,)
        "down_w": 0.1 * jax.random.normal(ks[0], (CSUB, CIN, 4, 4), jnp.float32),
        "down_b": 0.1 * jax.random.normal(ks[1], (CSUB,), jnp.float32),
        "down_gamma": 1.0 + 0.1 * jax.random.normal(ks[2], (CSUB,), jnp.float32),
        "down_beta": 0.1 * jax.random.normal(ks[3], (CSUB,), jnp.float32),
        # ConvTranspose2d(in=8, out=8, k=4): weight (Cin, Cout, Kh, Kw), bias (Cout,)
        "up_w": 0.1 * jax.random.normal(ks[4], (CSUB, CUP, 4, 4), jnp.float32),
        "up_b": 0.1 * jax.random.normal(ks[5], (CUP,), jnp.float32),
        "up_gamma": 1.0 + 0.1 * jax.random.normal(ks[6], (CUP,), jnp.float32),
        "up_beta": 0.1 * jax.random.normal(ks[7], (CUP,), jnp.float32),
    }
    x = jax.random.normal(ks[8], (N, CIN, H, W), jnp.float32)

    out = jax.block_until_ready(jax.jit(unet_skip_block_forward)(x, params))
    assert out.shape == (N, COUT, H, W), out.shape

    ref = jax.block_until_ready(jax.jit(unet_skip_block_ref)(x, params))
    max_err = float(jnp.max(jnp.abs(out - ref)))
    assert jnp.allclose(out, ref, atol=1e-2, rtol=1e-2), max_err

    print("KERNEL_OK")
</pallas_src>

<mosaic_0001>
module attributes {stable_mosaic.version = 11 : i64} {
  func.func @_down_conv_stats_kernel(%arg0: i32, %arg1: memref<1x2x2x9x9x4xbf16, #tpu.memory_space<vmem>>, %arg2: memref<8x64xbf16, #tpu.memory_space<vmem>>, %arg3: memref<1x8x64xbf16, #tpu.memory_space<vmem>>, %arg4: memref<1x8x2xf32, #tpu.memory_space<vmem>>) attributes {dimension_semantics = [#tpu.dimension_semantics<parallel>], iteration_bounds = array<i64: 2>, scalar_prefetch = 0 : i64, scratch_operands = 0 : i64, tpu.core_type = #tpu.core_type<tc>, window_params = [{transform_indices = @transform_0, window_bounds = array<i64: 1, 2, 2, 9, 9, 4>}, {pipeline_mode = #tpu.pipeline_mode<synchronous>, transform_indices = @transform_1, window_bounds = array<i64: 8, 64>}, {transform_indices = @transform_2, window_bounds = array<i64: 1, 8, 64>}, {transform_indices = @transform_3, window_bounds = array<i64: 1, 8, 2>}]} {
    %c0 = arith.constant 0 : index
    %c0_0 = arith.constant 0 : index
    %c0_1 = arith.constant 0 : index
    %c0_2 = arith.constant 0 : index
    %c0_3 = arith.constant 0 : index
    %c0_4 = arith.constant 0 : index
    %0 = vector.load %arg1[%c0, %c0_0, %c0_1, %c0_2, %c0_3, %c0_4] : memref<1x2x2x9x9x4xbf16, #tpu.memory_space<vmem>>, vector<1x1x1x9x9x4xbf16>
    %1 = vector.shape_cast %0 : vector<1x1x1x9x9x4xbf16> to vector<9x9x4xbf16>
    %2 = vector.extract_strided_slice %1 {offsets = [0, 0, 0], sizes = [8, 8, 4], strides = [1, 1, 1]} : vector<9x9x4xbf16> to vector<8x8x4xbf16>
    %3 = vector.shape_cast %2 : vector<8x8x4xbf16> to vector<64x4xbf16>
    %4 = vector.extract_strided_slice %1 {offsets = [0, 1, 0], sizes = [8, 8, 4], strides = [1, 1, 1]} : vector<9x9x4xbf16> to vector<8x8x4xbf16>
    %5 = vector.shape_cast %4 : vector<8x8x4xbf16> to vector<64x4xbf16>
    %6 = vector.extract_strided_slice %1 {offsets = [1, 0, 0], sizes = [8, 8, 4], strides = [1, 1, 1]} : vector<9x9x4xbf16> to vector<8x8x4xbf16>
    %7 = vector.shape_cast %6 : vector<8x8x4xbf16> to vector<64x4xbf16>
    %8 = vector.extract_strided_slice %1 {offsets = [1, 1, 0], sizes = [8, 8, 4], strides = [1, 1, 1]} : vector<9x9x4xbf16> to vector<8x8x4xbf16>
    %9 = vector.shape_cast %8 : vector<8x8x4xbf16> to vector<64x4xbf16>
    %c0_5 = arith.constant 0 : index
    %c0_6 = arith.constant 0 : index
    %c1 = arith.constant 1 : index
    %c0_7 = arith.constant 0 : index
    %c0_8 = arith.constant 0 : index
    %c0_9 = arith.constant 0 : index
    %10 = vector.load %arg1[%c0_5, %c0_6, %c1, %c0_7, %c0_8, %c0_9] : memref<1x2x2x9x9x4xbf16, #tpu.memory_space<vmem>>, vector<1x1x1x9x9x4xbf16>
    %11 = vector.shape_cast %10 : vector<1x1x1x9x9x4xbf16> to vector<9x9x4xbf16>
    %12 = vector.extract_strided_slice %11 {offsets = [0, 0, 0], sizes = [8, 8, 4], strides = [1, 1, 1]} : vector<9x9x4xbf16> to vector<8x8x4xbf16>
    %13 = vector.shape_cast %12 : vector<8x8x4xbf16> to vector<64x4xbf16>
    %14 = vector.extract_strided_slice %11 {offsets = [0, 1, 0], sizes = [8, 8, 4], strides = [1, 1, 1]} : vector<9x9x4xbf16> to vector<8x8x4xbf16>
    %15 = vector.shape_cast %14 : vector<8x8x4xbf16> to vector<64x4xbf16>
    %16 = vector.extract_strided_slice %11 {offsets = [1, 0, 0], sizes = [8, 8, 4], strides = [1, 1, 1]} : vector<9x9x4xbf16> to vector<8x8x4xbf16>
    %17 = vector.shape_cast %16 : vector<8x8x4xbf16> to vector<64x4xbf16>
    %18 = vector.extract_strided_slice %11 {offsets = [1, 1, 0], sizes = [8, 8, 4], strides = [1, 1, 1]} : vector<9x9x4xbf16> to vector<8x8x4xbf16>
    %19 = vector.shape_cast %18 : vector<8x8x4xbf16> to vector<64x4xbf16>
    %c0_10 = arith.constant 0 : index
    %c1_11 = arith.constant 1 : index
    %c0_12 = arith.constant 0 : index
    %c0_13 = arith.constant 0 : index
    %c0_14 = arith.constant 0 : index
    %c0_15 = arith.constant 0 : index
    %20 = vector.load %arg1[%c0_10, %c1_11, %c0_12, %c0_13, %c0_14, %c0_15] : memref<1x2x2x9x9x4xbf16, #tpu.memory_space<vmem>>, vector<1x1x1x9x9x4xbf16>
    %21 = vector.shape_cast %20 : vector<1x1x1x9x9x4xbf16> to vector<9x9x4xbf16>
    %22 = vector.extract_strided_slice %21 {offsets = [0, 0, 0], sizes = [8, 8, 4], strides = [1, 1, 1]} : vector<9x9x4xbf16> to vector<8x8x4xbf16>
    %23 = vector.shape_cast %22 : vector<8x8x4xbf16> to vector<64x4xbf16>
    %24 = vector.extract_strided_slice %21 {offsets = [0, 1, 0], sizes = [8, 8, 4], strides = [1, 1, 1]} : vector<9x9x4xbf16> to vector<8x8x4xbf16>
    %25 = vector.shape_cast %24 : vector<8x8x4xbf16> to vector<64x4xbf16>
    %26 = vector.extract_strided_slice %21 {offsets = [1, 0, 0], sizes = [8, 8, 4], strides = [1, 1, 1]} : vector<9x9x4xbf16> to vector<8x8x4xbf16>
    %27 = vector.shape_cast %26 : vector<8x8x4xbf16> to vector<64x4xbf16>
    %28 = vector.extract_strided_slice %21 {offsets = [1, 1, 0], sizes = [8, 8, 4], strides = [1, 1, 1]} : vector<9x9x4xbf16> to vector<8x8x4xbf16>
    %29 = vector.shape_cast %28 : vector<8x8x4xbf16> to vector<64x4xbf16>
    %c0_16 = arith.constant 0 : index
    %c1_17 = arith.constant 1 : index
    %c1_18 = arith.constant 1 : index
    %c0_19 = arith.constant 0 : index
    %c0_20 = arith.constant 0 : index
    %c0_21 = arith.constant 0 : index
    %30 = vector.load %arg1[%c0_16, %c1_17, %c1_18, %c0_19, %c0_20, %c0_21] : memref<1x2x2x9x9x4xbf16, #tpu.memory_space<vmem>>, vector<1x1x1x9x9x4xbf16>
    %31 = vector.shape_cast %30 : vector<1x1x1x9x9x4xbf16> to vector<9x9x4xbf16>
    %32 = vector.extract_strided_slice %31 {offsets = [0, 0, 0], sizes = [8, 8, 4], strides = [1, 1, 1]} : vector<9x9x4xbf16> to vector<8x8x4xbf16>
    %33 = vector.shape_cast %32 : vector<8x8x4xbf16> to vector<64x4xbf16>
    %34 = vector.extract_strided_slice %31 {offsets = [0, 1, 0], sizes = [8, 8, 4], strides = [1, 1, 1]} : vector<9x9x4xbf16> to vector<8x8x4xbf16>
    %35 = vector.shape_cast %34 : vector<8x8x4xbf16> to vector<64x4xbf16>
    %36 = vector.extract_strided_slice %31 {offsets = [1, 0, 0], sizes = [8, 8, 4], strides = [1, 1, 1]} : vector<9x9x4xbf16> to vector<8x8x4xbf16>
    %37 = vector.shape_cast %36 : vector<8x8x4xbf16> to vector<64x4xbf16>
    %38 = vector.extract_strided_slice %31 {offsets = [1, 1, 0], sizes = [8, 8, 4], strides = [1, 1, 1]} : vector<9x9x4xbf16> to vector<8x8x4xbf16>
    %39 = vector.shape_cast %38 : vector<8x8x4xbf16> to vector<64x4xbf16>
    %40 = tpu.concatenate %3, %5, %7, %9, %13, %15, %17, %19, %23, %25, %27, %29, %33, %35, %37, %39 in 1 : vector<64x4xbf16>, vector<64x4xbf16>, vector<64x4xbf16>, vector<64x4xbf16>, vector<64x4xbf16>, vector<64x4xbf16>, vector<64x4xbf16>, vector<64x4xbf16>, vector<64x4xbf16>, vector<64x4xbf16>, vector<64x4xbf16>, vector<64x4xbf16>, vector<64x4xbf16>, vector<64x4xbf16>, vector<64x4xbf16>, vector<64x4xbf16> -> vector<64x64xbf16>
    %c0_22 = arith.constant 0 : index
    %c0_23 = arith.constant 0 : index
    %41 = vector.load %arg2[%c0_22, %c0_23] : memref<8x64xbf16, #tpu.memory_space<vmem>>, vector<8x64xbf16>
    %cst = arith.constant dense<0.000000e+00> : vector<8x64xf32>
    %42 = tpu.matmul %41, %40, %cst {dimension_numbers = #tpu.dot_dimension_numbers<[1], [1], [0], [0], [0, 0, 1, 0], [], []>} : vector<8x64xbf16>, vector<64x64xbf16>, vector<8x64xf32> -> vector<8x64xf32>
    %43 = arith.truncf %42 : vector<8x64xf32> to vector<8x64xbf16>
    %c0_24 = arith.constant 0 : index
    %c0_25 = arith.constant 0 : index
    %c0_26 = arith.constant 0 : index
    %44 = vector.load %arg3[%c0_24, %c0_25, %c0_26] : memref<1x8x64xbf16, #tpu.memory_space<vmem>>, vector<1x8x64xbf16>
    %45 = vector.shape_cast %44 : vector<1x8x64xbf16> to vector<8x64xbf16>
    %46 = vector.shape_cast %43 : vector<8x64xbf16> to vector<1x8x64xbf16>
    tpu.vector_store %arg3[%c0_24, %c0_25, %c0_26], %46 {strides = array<i32>} : memref<1x8x64xbf16, #tpu.memory_space<vmem>>, vector<1x8x64xbf16>,
    %47 = arith.extf %43 : vector<8x64xbf16> to vector<8x64xf32>
    %cst_27 = arith.constant dense<0.000000e+00> : vector<8xf32>
    %48 = vector.multi_reduction <add>, %47, %cst_27 [1] : vector<8x64xf32> to vector<8xf32>
    %49 = vector.shape_cast %48 : vector<8xf32> to vector<8x1xf32>
    %50 = arith.mulf %47, %47 : vector<8x64xf32>
    %cst_28 = arith.constant dense<0.000000e+00> : vector<8xf32>
    %51 = vector.multi_reduction <add>, %50, %cst_28 [1] : vector<8x64xf32> to vector<8xf32>
    %52 = vector.shape_cast %51 : vector<8xf32> to vector<8x1xf32>
    %53 = tpu.concatenate %49, %52 in 1 : vector<8x1xf32>, vector<8x1xf32> -> vector<8x2xf32>
    %c0_29 = arith.constant 0 : index
    %c0_30 = arith.constant 0 : index
    %c0_31 = arith.constant 0 : index
    %54 = vector.load %arg4[%c0_29, %c0_30, %c0_31] : memref<1x8x2xf32, #tpu.memory_space<vmem>>, vector<1x8x2xf32>
    %55 = vector.shape_cast %54 : vector<1x8x2xf32> to vector<8x2xf32>
    %56 = vector.shape_cast %53 : vector<8x2xf32> to vector<1x8x2xf32>
    tpu.vector_store %arg4[%c0_29, %c0_30, %c0_31], %56 {strides = array<i32>} : memref<1x8x2xf32, #tpu.memory_space<vmem>>, vector<1x8x2xf32>,
    return
  }
  func.func @transform_0(%arg0: i32) -> (i32, i32, i32, i32, i32, i32) {
    %c0_i32 = arith.constant 0 : i32
    %c0_i32_0 = arith.constant 0 : i32
    %c0_i32_1 = arith.constant 0 : i32
    %c0_i32_2 = arith.constant 0 : i32
    %c0_i32_3 = arith.constant 0 : i32
    %c0_i32_4 = arith.constant 0 : i32
    return %arg0, %c0_i32, %c0_i32_0, %c0_i32_1, %c0_i32_2, %c0_i32_3 : i32, i32, i32, i32, i32, i32
  }
  func.func @transform_1(%arg0: i32) -> (i32, i32) {
    %c0_i32 = arith.constant 0 : i32
    %c0_i32_0 = arith.constant 0 : i32
    %c0_i32_1 = arith.constant 0 : i32
    return %c0_i32, %c0_i32_0 : i32, i32
  }
  func.func @transform_2(%arg0: i32) -> (i32, i32, i32) {
    %c0_i32 = arith.constant 0 : i32
    %c0_i32_0 = arith.constant 0 : i32
    %c0_i32_1 = arith.constant 0 : i32
    return %arg0, %c0_i32, %c0_i32_0 : i32, i32, i32
  }
  func.func @transform_3(%arg0: i32) -> (i32, i32, i32) {
    %c0_i32 = arith.constant 0 : i32
    %c0_i32_0 = arith.constant 0 : i32
    %c0_i32_1 = arith.constant 0 : i32
    return %arg0, %c0_i32, %c0_i32_0 : i32, i32, i32
  }
}

module attributes {stable_mosaic.version = 11 : i64} {
  func.func @_up_conv_stats_kernel(%arg0: i32, %arg1: memref<1x8x64xbf16, #tpu.memory_space<vmem>>, %arg2: memref<8x1xf32, #tpu.memory_space<vmem>>, %arg3: memref<8x1xf32, #tpu.memory_space<vmem>>, %arg4: memref<1x64xi32, #tpu.memory_space<vmem>>, %arg5: memref<4x8x32xbf16, #tpu.memory_space<vmem>>, %arg6: memref<1x4x8x64xbf16, #tpu.memory_space<vmem>>, %arg7: memref<1x8x2xf32, #tpu.memory_space<vmem>>) attributes {dimension_semantics = [#tpu.dimension_semantics<parallel>], iteration_bounds = array<i64: 2>, scalar_prefetch = 0 : i64, scratch_operands = 0 : i64, tpu.core_type = #tpu.core_type<tc>, window_params = [{transform_indices = @transform_0, window_bounds = array<i64: 1, 8, 64>}, {pipeline_mode = #tpu.pipeline_mode<synchronous>, transform_indices = @transform_1, window_bounds = array<i64: 8, 1>}, {pipeline_mode = #tpu.pipeline_mode<synchronous>, transform_indices = @transform_2, window_bounds = array<i64: 8, 1>}, {pipeline_mode = #tpu.pipeline_mode<synchronous>, transform_indices = @transform_3, window_bounds = array<i64: 1, 64>}, {pipeline_mode = #tpu.pipeline_mode<synchronous>, transform_indices = @transform_4, window_bounds = array<i64: 4, 8, 32>}, {transform_indices = @transform_5, window_bounds = array<i64: 1, 4, 8, 64>}, {transform_indices = @transform_6, window_bounds = array<i64: 1, 8, 2>}]} {
    %c0 = arith.constant 0 : index
    %c0_0 = arith.constant 0 : index
    %c0_1 = arith.constant 0 : index
    %0 = vector.load %arg1[%c0, %c0_0, %c0_1] : memref<1x8x64xbf16, #tpu.memory_space<vmem>>, vector<1x8x64xbf16>
    %1 = vector.shape_cast %0 : vector<1x8x64xbf16> to vector<8x64xbf16>
    %2 = arith.extf %1 : vector<8x64xbf16> to vector<8x64xf32>
    %c0_2 = arith.constant 0 : index
    %c0_3 = arith.constant 0 : index
    %3 = vector.load %arg2[%c0_2, %c0_3] : memref<8x1xf32, #tpu.memory_space<vmem>>, vector<8x1xf32>
    %4 = vector.broadcast %3 : vector<8x1xf32> to vector<8x64xf32>
    %5 = arith.mulf %2, %4 : vector<8x64xf32>
    %c0_4 = arith.constant 0 : index
    %c0_5 = arith.constant 0 : index
    %6 = vector.load %arg3[%c0_4, %c0_5] : memref<8x1xf32, #tpu.memory_space<vmem>>, vector<8x1xf32>
    %7 = vector.broadcast %6 : vector<8x1xf32> to vector<8x64xf32>
    %8 = arith.addf %5, %7 : vector<8x64xf32>
    %cst = arith.constant 0.000000e+00 : f32
    %9 = vector.broadcast %cst : f32 to vector<8x64xf32>
    %10 = arith.cmpf oge, %8, %9 : vector<8x64xf32>
    %cst_6 = arith.constant 2.000000e-01 : f32
    %11 = vector.broadcast %cst_6 : f32 to vector<8x64xf32>
    %12 = arith.mulf %11, %8 : vector<8x64xf32>
    %13 = arith.select %10, %8, %12 : vector<8x64xi1>, vector<8x64xf32>
    %14 = arith.truncf %13 : vector<8x64xf32> to vector<8x64xbf16>
    %c0_7 = arith.constant 0 : index
    %c0_8 = arith.constant 0 : index
    %15 = vector.load %arg4[%c0_7, %c0_8] : memref<1x64xi32, #tpu.memory_space<vmem>>, vector<1x64xi32>
    %cst_9 = arith.constant 0.000000e+00 : bf16
    %16 = vector.broadcast %cst_9 : bf16 to vector<8x9xbf16>
    %17 = vector.extract_strided_slice %14 {offsets = [0, 0], sizes = [8, 55], strides = [1, 1]} : vector<8x64xbf16> to vector<8x55xbf16>
    %18 = tpu.concatenate %16, %17 in 1 : vector<8x9xbf16>, vector<8x55xbf16> -> vector<8x64xbf16>
    %c-1_i32 = arith.constant -1 : i32
    %19 = vector.broadcast %c-1_i32 : i32 to vector<1x64xi32>
    %20 = arith.addi %15, %19 : vector<1x64xi32>
    %c0_i32 = arith.constant 0 : i32
    %21 = vector.broadcast %c0_i32 : i32 to vector<1x64xi32>
    %22 = arith.cmpi sge, %20, %21 : vector<1x64xi32>
    %c-1_i32_10 = arith.constant -1 : i32
    %23 = vector.broadcast %c-1_i32_10 : i32 to vector<1x64xi32>
    %24 = arith.addi %15, %23 : vector<1x64xi32>
    %c8_i32 = arith.constant 8 : i32
    %25 = vector.broadcast %c8_i32 : i32 to vector<1x64xi32>
    %26 = arith.cmpi slt, %24, %25 : vector<1x64xi32>
    %27 = arith.andi %22, %26 : vector<1x64xi1>
    %cst_11 = arith.constant 0.000000e+00 : bf16
    %28 = vector.broadcast %cst_11 : bf16 to vector<8x64xbf16>
    %29 = vector.shape_cast %27 : vector<1x64xi1> to vector<1x64xi1>
    %30 = vector.broadcast %29 : vector<1x64xi1> to vector<8x64xi1>
    %31 = arith.select %30, %18, %28 : vector<8x64xi1>, vector<8x64xbf16>
    %cst_12 = arith.constant 0.000000e+00 : bf16
    %32 = vector.broadcast %cst_12 : bf16 to vector<8x8xbf16>
    %33 = vector.extract_strided_slice %14 {offsets = [0, 0], sizes = [8, 56], strides = [1, 1]} : vector<8x64xbf16> to vector<8x56xbf16>
    %34 = tpu.concatenate %32, %33 in 1 : vector<8x8xbf16>, vector<8x56xbf16> -> vector<8x64xbf16>
    %cst_13 = arith.constant 0.000000e+00 : bf16
    %35 = vector.broadcast %cst_13 : bf16 to vector<8x7xbf16>
    %36 = vector.extract_strided_slice %14 {offsets = [0, 0], sizes = [8, 57], strides = [1, 1]} : vector<8x64xbf16> to vector<8x57xbf16>
    %37 = tpu.concatenate %35, %36 in 1 : vector<8x7xbf16>, vector<8x57xbf16> -> vector<8x64xbf16>
    %c1_i32 = arith.constant 1 : i32
    %38 = vector.broadcast %c1_i32 : i32 to vector<1x64xi32>
    %39 = arith.addi %15, %38 : vector<1x64xi32>
    %c0_i32_14 = arith.constant 0 : i32
    %40 = vector.broadcast %c0_i32_14 : i32 to vector<1x64xi32>
    %41 = arith.cmpi sge, %39, %40 : vector<1x64xi32>
    %c1_i32_15 = arith.constant 1 : i32
    %42 = vector.broadcast %c1_i32_15 : i32 to vector<1x64xi32>
    %43 = arith.addi %15, %42 : vector<1x64xi32>
    %c8_i32_16 = arith.constant 8 : i32
    %44 = vector.broadcast %c8_i32_16 : i32 to vector<1x64xi32>
    %45 = arith.cmpi slt, %43, %44 : vector<1x64xi32>
    %46 = arith.andi %41, %45 : vector<1x64xi1>
    %cst_17 = arith.constant 0.000000e+00 : bf16
    %47 = vector.broadcast %cst_17 : bf16 to vector<8x64xbf16>
    %48 = vector.shape_cast %46 : vector<1x64xi1> to vector<1x64xi1>
    %49 = vector.broadcast %48 : vector<1x64xi1> to vector<8x64xi1>
    %50 = arith.select %49, %37, %47 : vector<8x64xi1>, vector<8x64xbf16>
    %cst_18 = arith.constant 0.000000e+00 : bf16
    %51 = vector.broadcast %cst_18 : bf16 to vector<8x1xbf16>
    %52 = vector.extract_strided_slice %14 {offsets = [0, 0], sizes = [8, 63], strides = [1, 1]} : vector<8x64xbf16> to vector<8x63xbf16>
    %53 = tpu.concatenate %51, %52 in 1 : vector<8x1xbf16>, vector<8x63xbf16> -> vector<8x64xbf16>
    %c-1_i32_19 = arith.constant -1 : i32
    %54 = vector.broadcast %c-1_i32_19 : i32 to vector<1x64xi32>
    %55 = arith.addi %15, %54 : vector<1x64xi32>
    %c0_i32_20 = arith.constant 0 : i32
    %56 = vector.broadcast %c0_i32_20 : i32 to vector<1x64xi32>
    %57 = arith.cmpi sge, %55, %56 : vector<1x64xi32>
    %c-1_i32_21 = arith.constant -1 : i32
    %58 = vector.broadcast %c-1_i32_21 : i32 to vector<1x64xi32>
    %59 = arith.addi %15, %58 : vector<1x64xi32>
    %c8_i32_22 = arith.constant 8 : i32
    %60 = vector.broadcast %c8_i32_22 : i32 to vector<1x64xi32>
    %61 = arith.cmpi slt, %59, %60 : vector<1x64xi32>
    %62 = arith.andi %57, %61 : vector<1x64xi1>
    %cst_23 = arith.constant 0.000000e+00 : bf16
    %63 = vector.broadcast %cst_23 : bf16 to vector<8x64xbf16>
    %64 = vector.shape_cast %62 : vector<1x64xi1> to vector<1x64xi1>
    %65 = vector.broadcast %64 : vector<1x64xi1> to vector<8x64xi1>
    %66 = arith.select %65, %53, %63 : vector<8x64xi1>, vector<8x64xbf16>
    %67 = vector.extract_strided_slice %14 {offsets = [0, 1], sizes = [8, 63], strides = [1, 1]} : vector<8x64xbf16> to vector<8x63xbf16>
    %cst_24 = arith.constant 0.000000e+00 : bf16
    %68 = vector.broadcast %cst_24 : bf16 to vector<8x1xbf16>
    %69 = tpu.concatenate %67, %68 in 1 : vector<8x63xbf16>, vector<8x1xbf16> -> vector<8x64xbf16>
    %c1_i32_25 = arith.constant 1 : i32
    %70 = vector.broadcast %c1_i32_25 : i32 to vector<1x64xi32>
    %71 = arith.addi %15, %70 : vector<1x64xi32>
    %c0_i32_26 = arith.constant 0 : i32
    %72 = vector.broadcast %c0_i32_26 : i32 to vector<1x64xi32>
    %73 = arith.cmpi sge, %71, %72 : vector<1x64xi32>
    %c1_i32_27 = arith.constant 1 : i32
    %74 = vector.broadcast %c1_i32_27 : i32 to vector<1x64xi32>
    %75 = arith.addi %15, %74 : vector<1x64xi32>
    %c8_i32_28 = arith.constant 8 : i32
    %76 = vector.broadcast %c8_i32_28 : i32 to vector<1x64xi32>
    %77 = arith.cmpi slt, %75, %76 : vector<1x64xi32>
    %78 = arith.andi %73, %77 : vector<1x64xi1>
    %cst_29 = arith.constant 0.000000e+00 : bf16
    %79 = vector.broadcast %cst_29 : bf16 to vector<8x64xbf16>
    %80 = vector.shape_cast %78 : vector<1x64xi1> to vector<1x64xi1>
    %81 = vector.broadcast %80 : vector<1x64xi1> to vector<8x64xi1>
    %82 = arith.select %81, %69, %79 : vector<8x64xi1>, vector<8x64xbf16>
    %83 = vector.extract_strided_slice %14 {offsets = [0, 7], sizes = [8, 57], strides = [1, 1]} : vector<8x64xbf16> to vector<8x57xbf16>
    %cst_30 = arith.constant 0.000000e+00 : bf16
    %84 = vector.broadcast %cst_30 : bf16 to vector<8x7xbf16>
    %85 = tpu.concatenate %83, %84 in 1 : vector<8x57xbf16>, vector<8x7xbf16> -> vector<8x64xbf16>
    %c-1_i32_31 = arith.constant -1 : i32
    %86 = vector.broadcast %c-1_i32_31 : i32 to vector<1x64xi32>
    %87 = arith.addi %15, %86 : vector<1x64xi32>
    %c0_i32_32 = arith.constant 0 : i32
    %88 = vector.broadcast %c0_i32_32 : i32 to vector<1x64xi32>
    %89 = arith.cmpi sge, %87, %88 : vector<1x64xi32>
    %c-1_i32_33 = arith.constant -1 : i32
    %90 = vector.broadcast %c-1_i32_33 : i32 to vector<1x64xi32>
    %91 = arith.addi %15, %90 : vector<1x64xi32>
    %c8_i32_34 = arith.constant 8 : i32
    %92 = vector.broadcast %c8_i32_34 : i32 to vector<1x64xi32>
    %93 = arith.cmpi slt, %91, %92 : vector<1x64xi32>
    %94 = arith.andi %89, %93 : vector<1x64xi1>
    %cst_35 = arith.constant 0.000000e+00 : bf16
    %95 = vector.broadcast %cst_35 : bf16 to vector<8x64xbf16>
    %96 = vector.shape_cast %94 : vector<1x64xi1> to vector<1x64xi1>
    %97 = vector.broadcast %96 : vector<1x64xi1> to vector<8x64xi1>
    %98 = arith.select %97, %85, %95 : vector<8x64xi1>, vector<8x64xbf16>
    %99 = vector.extract_strided_slice %14 {offsets = [0, 8], sizes = [8, 56], strides = [1, 1]} : vector<8x64xbf16> to vector<8x56xbf16>
    %cst_36 = arith.constant 0.000000e+00 : bf16
    %100 = vector.broadcast %cst_36 : bf16 to vector<8x8xbf16>
    %101 = tpu.concatenate %99, %100 in 1 : vector<8x56xbf16>, vector<8x8xbf16> -> vector<8x64xbf16>
    %102 = vector.extract_strided_slice %14 {offsets = [0, 9], sizes = [8, 55], strides = [1, 1]} : vector<8x64xbf16> to vector<8x55xbf16>
    %cst_37 = arith.constant 0.000000e+00 : bf16
    %103 = vector.broadcast %cst_37 : bf16 to vector<8x9xbf16>
    %104 = tpu.concatenate %102, %103 in 1 : vector<8x55xbf16>, vector<8x9xbf16> -> vector<8x64xbf16>
    %c1_i32_38 = arith.constant 1 : i32
    %105 = vector.broadcast %c1_i32_38 : i32 to vector<1x64xi32>
    %106 = arith.addi %15, %105 : vector<1x64xi32>
    %c0_i32_39 = arith.constant 0 : i32
    %107 = vector.broadcast %c0_i32_39 : i32 to vector<1x64xi32>
    %108 = arith.cmpi sge, %106, %107 : vector<1x64xi32>
    %c1_i32_40 = arith.constant 1 : i32
    %109 = vector.broadcast %c1_i32_40 : i32 to vector<1x64xi32>
    %110 = arith.addi %15, %109 : vector<1x64xi32>
    %c8_i32_41 = arith.constant 8 : i32
    %111 = vector.broadcast %c8_i32_41 : i32 to vector<1x64xi32>
    %112 = arith.cmpi slt, %110, %111 : vector<1x64xi32>
    %113 = arith.andi %108, %112 : vector<1x64xi1>
    %cst_42 = arith.constant 0.000000e+00 : bf16
    %114 = vector.broadcast %cst_42 : bf16 to vector<8x64xbf16>
    %115 = vector.shape_cast %113 : vector<1x64xi1> to vector<1x64xi1>
    %116 = vector.broadcast %115 : vector<1x64xi1> to vector<8x64xi1>
    %117 = arith.select %116, %104, %114 : vector<8x64xi1>, vector<8x64xbf16>
    %cst_43 = arith.constant 0.000000e+00 : f32
    %118 = vector.broadcast %cst_43 : f32 to vector<8x1xf32>
    %cst_44 = arith.constant 0.000000e+00 : f32
    %119 = vector.broadcast %cst_44 : f32 to vector<8x1xf32>
    %120 = tpu.concatenate %31, %34, %66, %14 in 0 : vector<8x64xbf16>, vector<8x64xbf16>, vector<8x64xbf16>, vector<8x64xbf16> -> vector<32x64xbf16>
    %c0_45 = arith.constant 0 : index
    %c0_46 = arith.constant 0 : index
    %c0_47 = arith.constant 0 : index
    %121 = vector.load %arg5[%c0_45, %c0_46, %c0_47] : memref<4x8x32xbf16, #tpu.memory_space<vmem>>, vector<1x8x32xbf16>
    %122 = vector.shape_cast %121 : vector<1x8x32xbf16> to vector<8x32xbf16>
    %cst_48 = arith.constant dense<0.000000e+00> : vector<8x64xf32>
    %123 = tpu.matmul %122, %120, %cst_48 {dimension_numbers = #tpu.dot_dimension_numbers<[1], [0], [0], [1], [0, 0, 1, 1], [], []>} : vector<8x32xbf16>, vector<32x64xbf16>, vector<8x64xf32> -> vector<8x64xf32>
    %124 = arith.truncf %123 : vector<8x64xf32> to vector<8x64xbf16>
    %c0_49 = arith.constant 0 : index
    %c0_50 = arith.constant 0 : index
    %c0_51 = arith.constant 0 : index
    %c0_52 = arith.constant 0 : index
    %125 = vector.load %arg6[%c0_49, %c0_50, %c0_51, %c0_52] : memref<1x4x8x64xbf16, #tpu.memory_space<vmem>>, vector<1x1x8x64xbf16>
    %126 = vector.shape_cast %125 : vector<1x1x8x64xbf16> to vector<8x64xbf16>
    %127 = vector.shape_cast %124 : vector<8x64xbf16> to vector<1x1x8x64xbf16>
    tpu.vector_store %arg6[%c0_49, %c0_50, %c0_51, %c0_52], %127 {strides = array<i32>} : memref<1x4x8x64xbf16, #tpu.memory_space<vmem>>, vector<1x1x8x64xbf16>,
    %128 = arith.extf %124 : vector<8x64xbf16> to vector<8x64xf32>
    %cst_53 = arith.constant dense<0.000000e+00> : vector<8xf32>
    %129 = vector.multi_reduction <add>, %128, %cst_53 [1] : vector<8x64xf32> to vector<8xf32>
    %130 = vector.shape_cast %129 : vector<8xf32> to vector<8x1xf32>
    %131 = arith.addf %118, %130 : vector<8x1xf32>
    %132 = arith.mulf %128, %128 : vector<8x64xf32>
    %cst_54 = arith.constant dense<0.000000e+00> : vector<8xf32>
    %133 = vector.multi_reduction <add>, %132, %cst_54 [1] : vector<8x64xf32> to vector<8xf32>
    %134 = vector.shape_cast %133 : vector<8xf32> to vector<8x1xf32>
    %135 = arith.addf %119, %134 : vector<8x1xf32>
    %136 = tpu.concatenate %34, %50, %14, %82 in 0 : vector<8x64xbf16>, vector<8x64xbf16>, vector<8x64xbf16>, vector<8x64xbf16> -> vector<32x64xbf16>
    %c1 = arith.constant 1 : index
    %c0_55 = arith.constant 0 : index
    %c0_56 = arith.constant 0 : index
    %137 = vector.load %arg5[%c1, %c0_55, %c0_56] : memref<4x8x32xbf16, #tpu.memory_space<vmem>>, vector<1x8x32xbf16>
    %138 = vector.shape_cast %137 : vector<1x8x32xbf16> to vector<8x32xbf16>
    %cst_57 = arith.constant dense<0.000000e+00> : vector<8x64xf32>
    %139 = tpu.matmul %138, %136, %cst_57 {dimension_numbers = #tpu.dot_dimension_numbers<[1], [0], [0], [1], [0, 0, 1, 1], [], []>} : vector<8x32xbf16>, vector<32x64xbf16>, vector<8x64xf32> -> vector<8x64xf32>
    %140 = arith.truncf %139 : vector<8x64xf32> to vector<8x64xbf16>
    %c0_58 = arith.constant 0 : index
    %c1_59 = arith.constant 1 : index
    %c0_60 = arith.constant 0 : index
    %c0_61 = arith.constant 0 : index
    %141 = vector.load %arg6[%c0_58, %c1_59, %c0_60, %c0_61] : memref<1x4x8x64xbf16, #tpu.memory_space<vmem>>, vector<1x1x8x64xbf16>
    %142 = vector.shape_cast %141 : vector<1x1x8x64xbf16> to vector<8x64xbf16>
    %143 = vector.shape_cast %140 : vector<8x64xbf16> to vector<1x1x8x64xbf16>
    tpu.vector_store %arg6[%c0_58, %c1_59, %c0_60, %c0_61], %143 {strides = array<i32>} : memref<1x4x8x64xbf16, #tpu.memory_space<vmem>>, vector<1x1x8x64xbf16>,
    %144 = arith.extf %140 : vector<8x64xbf16> to vector<8x64xf32>
    %cst_62 = arith.constant dense<0.000000e+00> : vector<8xf32>
    %145 = vector.multi_reduction <add>, %144, %cst_62 [1] : vector<8x64xf32> to vector<8xf32>
    %146 = vector.shape_cast %145 : vector<8xf32> to vector<8x1xf32>
    %147 = arith.addf %131, %146 : vector<8x1xf32>
    %148 = arith.mulf %144, %144 : vector<8x64xf32>
    %cst_63 = arith.constant dense<0.000000e+00> : vector<8xf32>
    %149 = vector.multi_reduction <add>, %148, %cst_63 [1] : vector<8x64xf32> to vector<8xf32>
    %150 = vector.shape_cast %149 : vector<8xf32> to vector<8x1xf32>
    %151 = arith.addf %135, %150 : vector<8x1xf32>
    %152 = tpu.concatenate %66, %14, %98, %101 in 0 : vector<8x64xbf16>, vector<8x64xbf16>, vector<8x64xbf16>, vector<8x64xbf16> -> vector<32x64xbf16>
    %c2 = arith.constant 2 : index
    %c0_64 = arith.constant 0 : index
    %c0_65 = arith.constant 0 : index
    %153 = vector.load %arg5[%c2, %c0_64, %c0_65] : memref<4x8x32xbf16, #tpu.memory_space<vmem>>, vector<1x8x32xbf16>
    %154 = vector.shape_cast %153 : vector<1x8x32xbf16> to vector<8x32xbf16>
    %cst_66 = arith.constant dense<0.000000e+00> : vector<8x64xf32>
    %155 = tpu.matmul %154, %152, %cst_66 {dimension_numbers = #tpu.dot_dimension_numbers<[1], [0], [0], [1], [0, 0, 1, 1], [], []>} : vector<8x32xbf16>, vector<32x64xbf16>, vector<8x64xf32> -> vector<8x64xf32>
    %156 = arith.truncf %155 : vector<8x64xf32> to vector<8x64xbf16>
    %c0_67 = arith.constant 0 : index
    %c2_68 = arith.constant 2 : index
    %c0_69 = arith.constant 0 : index
    %c0_70 = arith.constant 0 : index
    %157 = vector.load %arg6[%c0_67, %c2_68, %c0_69, %c0_70] : memref<1x4x8x64xbf16, #tpu.memory_space<vmem>>, vector<1x1x8x64xbf16>
    %158 = vector.shape_cast %157 : vector<1x1x8x64xbf16> to vector<8x64xbf16>
    %159 = vector.shape_cast %156 : vector<8x64xbf16> to vector<1x1x8x64xbf16>
    tpu.vector_store %arg6[%c0_67, %c2_68, %c0_69, %c0_70], %159 {strides = array<i32>} : memref<1x4x8x64xbf16, #tpu.memory_space<vmem>>, vector<1x1x8x64xbf16>,
    %160 = arith.extf %156 : vector<8x64xbf16> to vector<8x64xf32>
    %cst_71 = arith.constant dense<0.000000e+00> : vector<8xf32>
    %161 = vector.multi_reduction <add>, %160, %cst_71 [1] : vector<8x64xf32> to vector<8xf32>
    %162 = vector.shape_cast %161 : vector<8xf32> to vector<8x1xf32>
    %163 = arith.addf %147, %162 : vector<8x1xf32>
    %164 = arith.mulf %160, %160 : vector<8x64xf32>
    %cst_72 = arith.constant dense<0.000000e+00> : vector<8xf32>
    %165 = vector.multi_reduction <add>, %164, %cst_72 [1] : vector<8x64xf32> to vector<8xf32>
    %166 = vector.shape_cast %165 : vector<8xf32> to vector<8x1xf32>
    %167 = arith.addf %151, %166 : vector<8x1xf32>
    %168 = tpu.concatenate %14, %82, %101, %117 in 0 : vector<8x64xbf16>, vector<8x64xbf16>, vector<8x64xbf16>, vector<8x64xbf16> -> vector<32x64xbf16>
    %c3 = arith.constant 3 : index
    %c0_73 = arith.constant 0 : index
    %c0_74 = arith.constant 0 : index
    %169 = vector.load %arg5[%c3, %c0_73, %c0_74] : memref<4x8x32xbf16, #tpu.memory_space<vmem>>, vector<1x8x32xbf16>
    %170 = vector.shape_cast %169 : vector<1x8x32xbf16> to vector<8x32xbf16>
    %cst_75 = arith.constant dense<0.000000e+00> : vector<8x64xf32>
    %171 = tpu.matmul %170, %168, %cst_75 {dimension_numbers = #tpu.dot_dimension_numbers<[1], [0], [0], [1], [0, 0, 1, 1], [], []>} : vector<8x32xbf16>, vector<32x64xbf16>, vector<8x64xf32> -> vector<8x64xf32>
    %172 = arith.truncf %171 : vector<8x64xf32> to vector<8x64xbf16>
    %c0_76 = arith.constant 0 : index
    %c3_77 = arith.constant 3 : index
    %c0_78 = arith.constant 0 : index
    %c0_79 = arith.constant 0 : index
    %173 = vector.load %arg6[%c0_76, %c3_77, %c0_78, %c0_79] : memref<1x4x8x64xbf16, #tpu.memory_space<vmem>>, vector<1x1x8x64xbf16>
    %174 = vector.shape_cast %173 : vector<1x1x8x64xbf16> to vector<8x64xbf16>
    %175 = vector.shape_cast %172 : vector<8x64xbf16> to vector<1x1x8x64xbf16>
    tpu.vector_store %arg6[%c0_76, %c3_77, %c0_78, %c0_79], %175 {strides = array<i32>} : memref<1x4x8x64xbf16, #tpu.memory_space<vmem>>, vector<1x1x8x64xbf16>,
    %176 = arith.extf %172 : vector<8x64xbf16> to vector<8x64xf32>
    %cst_80 = arith.constant dense<0.000000e+00> : vector<8xf32>
    %177 = vector.multi_reduction <add>, %176, %cst_80 [1] : vector<8x64xf32> to vector<8xf32>
    %178 = vector.shape_cast %177 : vector<8xf32> to vector<8x1xf32>
    %179 = arith.addf %163, %178 : vector<8x1xf32>
    %180 = arith.mulf %176, %176 : vector<8x64xf32>
    %cst_81 = arith.constant dense<0.000000e+00> : vector<8xf32>
    %181 = vector.multi_reduction <add>, %180, %cst_81 [1] : vector<8x64xf32> to vector<8xf32>
    %182 = vector.shape_cast %181 : vector<8xf32> to vector<8x1xf32>
    %183 = arith.addf %167, %182 : vector<8x1xf32>
    %184 = tpu.concatenate %179, %183 in 1 : vector<8x1xf32>, vector<8x1xf32> -> vector<8x2xf32>
    %c0_82 = arith.constant 0 : index
    %c0_83 = arith.constant 0 : index
    %c0_84 = arith.constant 0 : index
    %185 = vector.load %arg7[%c0_82, %c0_83, %c0_84] : memref<1x8x2xf32, #tpu.memory_space<vmem>>, vector<1x8x2xf32>
    %186 = vector.shape_cast %185 : vector<1x8x2xf32> to vector<8x2xf32>
    %187 = vector.shape_cast %184 : vector<8x2xf32> to vector<1x8x2xf32>
    tpu.vector_store %arg7[%c0_82, %c0_83, %c0_84], %187 {strides = array<i32>} : memref<1x8x2xf32, #tpu.memory_space<vmem>>, vector<1x8x2xf32>,
    return
  }
  func.func @transform_0(%arg0: i32) -> (i32, i32, i32) {
    %c0_i32 = arith.constant 0 : i32
    %c0_i32_0 = arith.constant 0 : i32
    %c0_i32_1 = arith.constant 0 : i32
    return %arg0, %c0_i32, %c0_i32_0 : i32, i32, i32
  }
  func.func @transform_1(%arg0: i32) -> (i32, i32) {
    %c0_i32 = arith.constant 0 : i32
    %c0_i32_0 = arith.constant 0 : i32
    %c0_i32_1 = arith.constant 0 : i32
    return %c0_i32, %c0_i32_0 : i32, i32
  }
  func.func @transform_2(%arg0: i32) -> (i32, i32) {
    %c0_i32 = arith.constant 0 : i32
    %c0_i32_0 = arith.constant 0 : i32
    %c0_i32_1 = arith.constant 0 : i32
    return %c0_i32, %c0_i32_0 : i32, i32
  }
  func.func @transform_3(%arg0: i32) -> (i32, i32) {
    %c0_i32 = arith.constant 0 : i32
    %c0_i32_0 = arith.constant 0 : i32
    %c0_i32_1 = arith.constant 0 : i32
    return %c0_i32, %c0_i32_0 : i32, i32
  }
  func.func @transform_4(%arg0: i32) -> (i32, i32, i32) {
    %c0_i32 = arith.constant 0 : i32
    %c0_i32_0 = arith.constant 0 : i32
    %c0_i32_1 = arith.constant 0 : i32
    %c0_i32_2 = arith.constant 0 : i32
    return %c0_i32, %c0_i32_0, %c0_i32_1 : i32, i32, i32
  }
  func.func @transform_5(%arg0: i32) -> (i32, i32, i32, i32) {
    %c0_i32 = arith.constant 0 : i32
    %c0_i32_0 = arith.constant 0 : i32
    %c0_i32_1 = arith.constant 0 : i32
    %c0_i32_2 = arith.constant 0 : i32
    return %arg0, %c0_i32, %c0_i32_0, %c0_i32_1 : i32, i32, i32, i32
  }
  func.func @transform_6(%arg0: i32) -> (i32, i32, i32) {
    %c0_i32 = arith.constant 0 : i32
    %c0_i32_0 = arith.constant 0 : i32
    %c0_i32_1 = arith.constant 0 : i32
    return %arg0, %c0_i32, %c0_i32_0 : i32, i32, i32
  }
}

</mosaic_0001>

<bundles_post_ra>
// kernel: unet_skip_block_forward.3
= control target key start
LH: loop header
LB: loop body
LE: loop exit
PB: predicated region body
PF: predicated region fallthrough
CT: control target
= control target key end

     0   :  { %s854_s21 = smov 0   ;;  %s978_s0 = inlined_call_operand.vmem [shape: bf16[2,8,64], index: 0, kind: input, shape index: {}]   ;;  %s979_s1 = inlined_call_operand.vmem [shape: f32[8,1], index: 1, kind: input, shape index: {}]   ;;  %s980_s2 = inlined_call_operand.vmem [shape: f32[8,1], index: 2, kind: input, shape index: {}]   ;;  %s981_s3 = inlined_call_operand.vmem [shape: s32[1,64], index: 3, kind: input, shape index: {}]   ;;  %s982_s4 = inlined_call_operand.vmem [shape: bf16[4,8,32], index: 4, kind: input, shape index: {}]   ;;  %s983_s5 = inlined_call_operand.vmem [shape: bf16[2,4,8,64], index: 5, kind: output, shape index: {0}]   ;;  %s984_s6 = inlined_call_operand.vmem [shape: f32[2,8,2], index: 6, kind: output, shape index: {1}]  }
   0x1 LB: > { %s714_s22 = sadd.s32 4294967295, %s806_s21   ;;  %p718_p0 = scmp.ge.s32.totalorder %s806_s21, 1  ;;  %s806_s21 = sphi %s854_s21, %s17_s21  }
   0x2   : > { %p214_p1 = scmp.lt.s32.totalorder %s806_s21, 3 }
   0x4   : > { %p215_p2 = pnand %p718_p0, %p214_p1 }
   0x5   : > { %v263_v0 = vld [vmem:[%s979_s1] sm:$0xff] (!%p215_p2)  ;;  %v808_v1 = vmov (!%p215_p2), 0   ;;  %p247_p3 = scmp.lt.s32.totalorder (!%p215_p2), %s714_s22, 1  ;;  %v809_v7 = vmov (!%p215_p2), 0.0   ;;  %vm810_vm1 = vmmov (!%p215_p2), 0   ;;  %s811_s7 = smov (!%p215_p2), 7   ;;  %v295_v15 = vlaneseq (!%p215_p2) }
   0x6   : > { %218 = sbr.rel (%p215_p2) target bundleno = 654 (0x28e), region = 40  ;;  %799 = vset.pattern.permute.xlu0 (!%p215_p2), %v808_v1  ;;  %v270_v2 = vld [vmem:[%s980_s2] sm:$0xff] (!%p215_p2)  ;;  %756 = vmatprep.subr.bf16.mxu1 (!%p215_p2), %v809_v7  ;;  %s812_s8 = smov (!%p215_p2), 8   ;;  %vm309_vm9 = vcmask (!%p215_p2), 56320   ;;  %vm304_vm11 = vcmask (!%p215_p2), 64512   ;;  %vm334_vm13 = vcmask (!%p215_p2), 515072  }
   0x7   : > { %266 = vperm.xlu0 (!%p215_p2), %799, %v263_v0   ;;  %748 = vmatprep.subr.bf16.mxu0 (!%p215_p2), %v809_v7  ;;  %s813_s9 = smov (!%p215_p2), 127   ;;  %s814_s10 = smov (!%p215_p2), 9   ;;  %v281_v13 = vld [vmem:[%s981_s3] sm:$0x1] (!%p215_p2)  ;;  %v296_v17 = vshrl.u32 (!%p215_p2), %v295_v15, 7  ;;  %vm285_vm14 = vcmask (!%p215_p2), 72704  }
   0x8   : > { %760 = vmatprep.mubr.msk.bf16.mxu1 (!%p215_p2), %vm810_vm1, %v809_v7  ;;  %752 = vmatprep.mubr.msk.bf16.mxu0 (!%p215_p2), %vm810_vm1, %v809_v7  ;;  %s815_s11 = smov (!%p215_p2), 121   ;;  %s816_s12 = smov (!%p215_p2), 1   ;;  %v313_v14 = vadd.s32 (!%p215_p2), 1, %v281_v13  ;;  %v290_v16 = vadd.s32 (!%p215_p2), 4294967295, %v281_v13  ;;  %vm361_vm15 = vcmask (!%p215_p2), 1043456  }
   0x9   : > { %s817_s13 = smov (!%p215_p2), 120   ;;  %s818_s14 = smov (!%p215_p2), 119   ;;  %v297_v18 = vsub.s32 (!%p215_p2), 0, %v296_v17  ;;  %v724_v46 = vld [vmem:[%s982_s4 + $0x4] sm:$0xf] (!%p215_p2) }
   0xa   : > { %vm314_vm2 = vcmp.ge.s32.totalorder (!%p215_p2), %v313_v14, 0  ;;  %vm315_vm3 = vcmp.lt.s32.totalorder (!%p215_p2), %v313_v14, 8  ;;  %vm291_vm5 = vcmp.ge.s32.totalorder (!%p215_p2), %v290_v16, 0  ;;  %vm292_vm6 = vcmp.lt.s32.totalorder (!%p215_p2), %v290_v16, 8  ;;  %v370_v50 = vld [vmem:[%s982_s4] sm:$0xf] (!%p215_p2) }
   0xb   : > { %273 = vperm.xlu0 (!%p215_p2), %799, %v270_v2   ;;  %vm316_vm4 = vmand (!%p215_p2), %vm314_vm2, %vm315_vm3  ;;  %vm327_vm2 = vcmask (!%p215_p2), 7168   ;;  %vm348_vm3 = vcmask (!%p215_p2), 457728   ;;  %v727_v60 = vld [vmem:[%s982_s4 + $0x8] sm:$0xf] (!%p215_p2)  ;;  %v730_v62 = vld [vmem:[%s982_s4 + $0xc] sm:$0xf] (!%p215_p2) }
   0xc   : > { %v317_v19 = vsel (!%p215_p2), %vm316_vm4, 1, %v808_v1  ;;  %vm293_vm7 = vmand (!%p215_p2), %vm291_vm5, %vm292_vm6  ;;  %vm371_vm4 = vcmask (!%p215_p2), 261120   ;;  %vm341_vm5 = vcmask (!%p215_p2), 465920   ;;  %vm353_vm6 = vcmask (!%p215_p2), 449536  }
   0xd   : > { %s990_s22 = smov (!%p247_p3, %s714_s22), 1  ;;  %v321_v20 = vrot.slane %v317_v19, %v297_v18  ;;  %v294_v21 = vsel %vm293_vm7, 1, %v808_v1  ;;  %vm419_vm7 = vcmask 523264  }
   0xe   : > { %s719_s27 = sshll.u32 %s990_s22, 2  ;;  %v298_v22 = vrot.slane %v294_v21, %v297_v18 }
   0xf   : > { %s250_s30 = scalar_lea.vmem %s978_s0, %s719_s27  ;;  %vm322_vm8 = vcmp.eq.s32.totalorder %v321_v20, 1  ;;  %s735_s27 = sshll.u32 %s990_s22, 4 }
  0x10   : > { %v261_v3 = vld [vmem:[%s250_s30] sm:$0xf]  ;;  %vm893_vm10 = vmpackc.low %vm322_vm8, %vm322_vm8  ;;  %vm299_vm12 = vcmp.eq.s32.totalorder %v298_v22, 1  ;;  %s952_s30 = scalar_lea.vmem %s983_s5, %s735_s27  ;;  %vm626_vm8 = vcmask 15360  }
  0x11   : > { %v262_v4 = vunpack.c.l.bf16 %v261_v3 }
  0x86   : > { %v267_v5 = vpop.permute.xlu0 %266 }
  0x87   : > { %v269_v6 = vmul.f32 %v267_v5, %v262_v4 }
  0x8a   : > { %v274_v8 = vpop.permute.xlu0 %273 }
  0x8b   : > { %v276_v9 = vadd.f32 %v274_v8, %v269_v6 }
  0x8d   : > { %vm277_vm0 = vcmp.ge.f32.partialorder %v276_v9, 0.0  ;;  %v278_v10 = vmul.f32 0.2, %v276_v9 }
  0x8f   : > { %v279_v11 = vsel %vm277_vm0, %v276_v9, %v278_v10  ;;  %vm899_vm0 = vmpackc.low %vm299_vm12, %vm299_vm12 }
  0x90   : > { %v876_v12 = vpack.c.bf16 %v279_v11, %v279_v11 }
  0x92   : > { %307 = vrot.lane.b32.xlu0 %v876_v12, %s811_s7  ;;  %302 = vrot.lane.b32.xlu1 %v876_v12, %s812_s8  ;;  %v360_v44 = vrot.slane %v876_v12, 4  ;;  %s722_s7 = sshll.u32 %s990_s22, 3 }
  0x96   : > { %332 = vrot.lane.b32.xlu0 %v876_v12, %s813_s9  ;;  %283 = vrot.lane.b32.xlu1 %v876_v12, %s814_s10  ;;  %s259_s10 = scalar_lea.vmem %s984_s6, %s722_s7 }
  0x9a   : > { %339 = vrot.lane.b32.xlu0 %v876_v12, %s815_s11  ;;  %325 = vrot.lane.b32.xlu1 %v876_v12, %s816_s12 }
  0x9e   : > { %346 = vrot.lane.b32.xlu1 %v876_v12, %s817_s13 }
  0xa2   : > { %351 = vrot.lane.b32.xlu1 %v876_v12, %s818_s14 }
 0x104   : > { %v308_v24 = vpop.permute.xlu0 %307  ;;  %v303_v25 = vpop.permute.xlu1 %302 }
 0x105   : > { %v311_v26 = vsel %vm309_vm9, 0, %v308_v24  ;;  %v306_v28 = vsel %vm304_vm11, 0, %v303_v25 }
 0x106   : > { %v324_v27 = vsel %vm893_vm10, %v311_v26, 0  ;;  %v359_v33 = vrot.slane %v306_v28, 4 }
 0x107   : > { %v430_v29 = vrot.slane %v324_v27, 4 }
 0x108   : > { %v333_v31 = vpop.permute.xlu0 %332  ;;  %v284_v32 = vpop.permute.xlu1 %283 }
 0x109   : > { %v336_v34 = vsel %vm334_vm13, %v333_v31, 0  ;;  %v288_v35 = vsel %vm285_vm14, 0, %v284_v32  ;;  %v434_v36 = vsel %vm361_vm15, %v306_v28, %v430_v29 }
 0x10a   : > { %v338_v37 = vsel %vm893_vm10, %v336_v34, 0  ;;  %v301_v38 = vsel %vm899_vm0, %v288_v35, 0  ;;  %757 = vmatpush3.bf16.msra.mxu1 %v434_v36 }
 0x10b   : > { %v432_v39 = vrot.slane %v338_v37, 4  ;;  %v364_v40 = vsel %vm361_vm15, %v301_v38, %v359_v33  ;;  %758 = vmatprep.subr.bf16.mxu1 %v809_v7 }
 0x10c   : > { %749 = vmatpush3.bf16.msra.mxu0 %v364_v40  ;;  %v326_v41 = vpop.permute.xlu1 %325  ;;  %v340_v48 = vpop.permute.xlu0 %339 }
 0x10d   : > { %v329_v42 = vsel %vm327_vm2, 0, %v326_v41  ;;  %v438_v43 = vsel %vm361_vm15, %v876_v12, %v432_v39  ;;  %750 = vmatprep.subr.bf16.mxu0 %v809_v7  ;;  %v343_v52 = vsel %vm341_vm5, %v340_v48, 0 }
 0x10e   : > { %v331_v45 = vsel %vm899_vm0, %v329_v42, 0  ;;  %759 = vmatpush3.bf16.msra.mxu1 %v438_v43  ;;  %v345_v56 = vsel %vm899_vm0, %v343_v52, 0 }
 0x10f   : > { %v368_v47 = vsel %vm361_vm15, %v331_v45, %v360_v44  ;;  %772 = vmatprep.subr.bf16.mxu1 %v809_v7 }
 0x110   : > { %v347_v49 = vpop.permute.xlu1 %346  ;;  %751 = vmatpush3.bf16.msra.mxu0 %v368_v47 }
 0x111   : > { %v350_v51 = vsel %vm348_vm3, %v347_v49, 0  ;;  %761 = vmatmul.mubr.msk.bf16.vlgmr.msra.gmra.mrb[0].mxu1 %vm371_vm4, %v724_v46  ;;  %764 = vmatprep.subr.bf16.mxu0 %v809_v7 }
 0x112   : > { %773 = vmatpush3.bf16.msra.mxu1 %v438_v43  ;;  %776 = vmatprep.mubr.msk.bf16.mxu1 %vm810_vm1, %v809_v7  ;;  %v499_v53 = vrot.slane %v350_v51, 4 }
 0x113   : > { %753 = vmatmul.mubr.msk.bf16.vlgmr.msra.gmra.mrb[0].mxu0 %vm371_vm4, %v370_v50  ;;  %774 = vmatprep.subr.bf16.mxu1 %v809_v7 }
 0x114   : > { %v352_v54 = vpop.permute.xlu1 %351  ;;  %765 = vmatpush3.bf16.msra.mxu0 %v368_v47  ;;  %768 = vmatprep.mubr.msk.bf16.mxu0 %vm810_vm1, %v809_v7  ;;  %v502_v59 = vsel %vm361_vm15, %v345_v56, %v499_v53  ;;  %vm416_vm1 = vcmask 519168  }
 0x115   : > { %v355_v55 = vsel %vm353_vm6, %v352_v54, 0  ;;  %766 = vmatprep.subr.bf16.mxu0 %v809_v7 }
 0x116   : > { %v357_v57 = vsel %vm893_vm10, %v355_v55, 0 }
 0x117   : > { %v563_v58 = vrot.slane %v357_v57, 4 }
 0x118   : > { %767 = vmatpush3.bf16.msra.mxu0 %v502_v59 }
 0x119   : > { %v565_v61 = vsel %vm361_vm15, %v350_v51, %v563_v58 }
 0x11a   : > { %775 = vmatpush3.bf16.msra.mxu1 %v565_v61 }
 0x11b   : > { %769 = vmatmul.mubr.msk.bf16.vlgmr.msra.gmra.mrb[4].mxu0 %vm371_vm4, %v727_v60 }
 0x11d   : > { %777 = vmatmul.mubr.msk.bf16.vlgmr.msra.gmra.mrb[4].mxu1 %vm371_vm4, %v730_v62 }
 0x1e4   : > { %v479_v63 = vpop.f32.mrb[0].mxu1 }
 0x1e5   : > { %v485_v0 = vpack.c.bf16 %v479_v63, %v479_v63  ;;  %v762_v1 = vpop.f32.mrb[1].mxu1 }
 0x1e6   : > { %v409_v2 = vpop.f32.mrb[0].mxu0  ;;  %v482_v3 = vpop.f32.mrb[2].mxu1 }
 0x1e7   : > { %v415_v4 = vpack.c.bf16 %v409_v2, %v409_v2  ;;  %v754_v5 = vpop.f32.mrb[1].mxu0  ;;  %726 = vst.msk [vmem:[%s952_s30 + $0x4] sm:$0xf] %vm416_vm1, %v485_v0  ;;  %v763_v6 = vpop.f32.mrb[3].mxu1  ;;  %v488_v10 = vunpack.c.l.bf16 %v485_v0 }
 0x1e8   : > { %v412_v7 = vpop.f32.mrb[2].mxu0 }
 0x1e9   : > { %417 = vst.msk [vmem:[%s952_s30] sm:$0xf] %vm416_vm1, %v415_v4  ;;  %v755_v8 = vpop.f32.mrb[3].mxu0  ;;  %v418_v9 = vunpack.c.l.bf16 %v415_v4  ;;  %v489_v14 = vsel %vm419_vm7, %v488_v10, 0.0  ;;  %v493_v18 = vmul.f32 %v488_v10, %v488_v10 }
 0x1eb   : > { %v420_v11 = vsel %vm419_vm7, %v418_v9, 0.0  ;;  %v424_v12 = vmul.f32 %v418_v9, %v418_v9  ;;  %v494_v27 = vsel %vm419_vm7, %v493_v18, 0.0 }
 0x1ec   : > { %421 = vadd.xlane.f32.xlu0 %v420_v11 }
 0x1ed   : > { %v425_v13 = vsel %vm419_vm7, %v424_v12, 0.0 }
 0x1ee   : > { %426 = vadd.xlane.f32.xlu1 %v425_v13  ;;  %v543_v15 = vpop.f32.mrb[4].mxu0 }
 0x1ef   : > { %v549_v16 = vpack.c.bf16 %v543_v15, %v543_v15  ;;  %v770_v17 = vpop.f32.mrb[5].mxu0 }
 0x1f0   : > { %490 = vadd.xlane.f32.xlu0 %v489_v14  ;;  %v546_v19 = vpop.f32.mrb[6].mxu0  ;;  %v606_v20 = vpop.f32.mrb[4].mxu1 }
 0x1f1   : > { %729 = vst.msk [vmem:[%s952_s30 + $0x8] sm:$0xf] %vm416_vm1, %v549_v16  ;;  %v771_v21 = vpop.f32.mrb[7].mxu0  ;;  %v612_v22 = vpack.c.bf16 %v606_v20, %v606_v20  ;;  %v778_v23 = vpop.f32.mrb[5].mxu1  ;;  %v552_v24 = vunpack.c.l.bf16 %v549_v16 }
 0x1f2   : > { %v609_v25 = vpop.f32.mrb[6].mxu1 }
 0x1f3   : > { %732 = vst.msk [vmem:[%s952_s30 + $0xc] sm:$0xf] %vm416_vm1, %v612_v22  ;;  %v779_v26 = vpop.f32.mrb[7].mxu1  ;;  %v553_v28 = vsel %vm419_vm7, %v552_v24, 0.0  ;;  %v557_v29 = vmul.f32 %v552_v24, %v552_v24  ;;  %v615_v30 = vunpack.c.l.bf16 %v612_v22 }
 0x1f4   : > { %495 = vadd.xlane.f32.xlu0 %v494_v27  ;;  %554 = vadd.xlane.f32.xlu1 %v553_v28 }
 0x1f5   : > { %v558_v31 = vsel %vm419_vm7, %v557_v29, 0.0  ;;  %v616_v32 = vsel %vm419_vm7, %v615_v30, 0.0  ;;  %v620_v33 = vmul.f32 %v615_v30, %v615_v30 }
 0x1f7   : > { %v621_v34 = vsel %vm419_vm7, %v620_v33, 0.0 }
 0x1f8   : > { %559 = vadd.xlane.f32.xlu0 %v558_v31  ;;  %617 = vadd.xlane.f32.xlu1 %v616_v32 }
 0x1fc   : > { %622 = vadd.xlane.f32.xlu0 %v621_v34 }
 0x279   : > { %v422_v35 = vpop.xlane.xlu0 %421 }
 0x27b   : > { %v427_v36 = vpop.xlane.xlu1 %426 }
 0x27d   : > { %v491_v37 = vpop.xlane.xlu0 %490 }
 0x27e   : > { %v492_v41 = vadd.f32 %v491_v37, %v422_v35 }
 0x281   : > { %v496_v38 = vpop.xlane.xlu0 %495  ;;  %v555_v39 = vpop.xlane.xlu1 %554 }
 0x282   : > { %v497_v42 = vadd.f32 %v496_v38, %v427_v36  ;;  %v556_v44 = vadd.f32 %v555_v39, %v492_v41 }
 0x285   : > { %v560_v40 = vpop.xlane.xlu0 %559  ;;  %v618_v43 = vpop.xlane.xlu1 %617 }
 0x286   : > { %v561_v45 = vadd.f32 %v560_v40, %v497_v42  ;;  %v619_v47 = vadd.f32 %v618_v43, %v556_v44 }
 0x289   : > { %v623_v46 = vpop.xlane.xlu0 %622 }
 0x28a   : > { %v624_v48 = vadd.f32 %v623_v46, %v561_v45 }
 0x28c   : > { %v625_v49 = vsel %vm327_vm2, %v619_v47, %v624_v48 }
 0x28d   : > { %627 = vst.msk [vmem:[%s259_s10] sm:$0xff] %vm626_vm8, %v625_v49 }
 0x28e PF: > { %s17_s21 = sadd.s32 1, %s806_s21  }
 0x28f   : > { %p14_p4 = scmp.ge.s32.totalorder %s17_s21, 4  }
 0x291   :  { %16 = sbr.rel (!%p14_p4) target bundleno = 1 (0x1), region = 88 }

// kernel: unet_skip_block_forward.2
= control target key start
LH: loop header
LB: loop body
LE: loop exit
PB: predicated region body
PF: predicated region fallthrough
CT: control target
= control target key end

     0   :  { %s1597_s12 = smov 0   ;;  %s2176_s0 = inlined_call_operand.vmem [shape: bf16[2,2,2,9,9,4], index: 0, kind: input, shape index: {}]   ;;  %s2177_s1 = inlined_call_operand.vmem [shape: bf16[8,64], index: 1, kind: input, shape index: {}]   ;;  %s2178_s2 = inlined_call_operand.vmem [shape: bf16[2,8,64], index: 2, kind: output, shape index: {0}]   ;;  %s2179_s3 = inlined_call_operand.vmem [shape: f32[2,8,2], index: 3, kind: output, shape index: {1}]  }
   0x1 LB: > { %s1346_s13 = sadd.s32 4294967295, %s1558_s12   ;;  %p1350_p0 = scmp.ge.s32.totalorder %s1558_s12, 1  ;;  %s1558_s12 = sphi %s1597_s12, %s14_s12  }
   0x2   : > { %p140_p1 = scmp.lt.s32.totalorder %s1558_s12, 3 }
   0x4   : > { %p141_p2 = pnand %p1350_p0, %p140_p1 }
   0x5   : > { %p167_p3 = scmp.lt.s32.totalorder (!%p141_p2), %s1346_s13, 1  ;;  %vm199_vm0 = vsmask.f32 (!%p141_p2), 3328  ;;  %vm200_vm1 = vsmask.f32 (!%p141_p2), 7440  ;;  %s1560_s18 = smov (!%p141_p2), 16  }
   0x6   : > { %144 = sbr.rel (%p141_p2) target bundleno = 636 (0x27c), region = 28  ;;  %s1561_s19 = smov (!%p141_p2), 8   ;;  %vm1649_vm2 = vmor (!%p141_p2), %vm199_vm0, %vm200_vm1  ;;  %vm1576_vm3 = vmmov (!%p141_p2), 0   ;;  %vm1055_vm4 = vcmask (!%p141_p2), 31744   ;;  %vm1068_vm5 = vcmask (!%p141_p2), 64512   ;;  %vm1077_vm6 = vcmask (!%p141_p2), 97280  }
   0x7   : > { %s1562_s20 = smov (!%p141_p2), 24   ;;  %s1563_s21 = smov (!%p141_p2), 32   ;;  %vm1086_vm7 = vcmask (!%p141_p2), 130048   ;;  %vm1095_vm8 = vcmask (!%p141_p2), 162816   ;;  %vm1104_vm9 = vcmask (!%p141_p2), 195584   ;;  %vm1113_vm10 = vcmask (!%p141_p2), 228352  }
   0x8   : > { %s1564_s22 = smov (!%p141_p2), 12   ;;  %s1565_s23 = smov (!%p141_p2), 4   ;;  %vm1122_vm11 = vcmask (!%p141_p2), 261120   ;;  %vm1131_vm12 = vcmask (!%p141_p2), 293888   ;;  %vm1140_vm13 = vcmask (!%p141_p2), 326656   ;;  %vm1149_vm14 = vcmask (!%p141_p2), 359424  }
   0x9   : > { %s1566_s24 = smov (!%p141_p2), 20   ;;  %s1567_s25 = smov (!%p141_p2), 36   ;;  %vm1158_vm15 = vcmask (!%p141_p2), 392192   ;;  %vm1167_vm0 = vcmask (!%p141_p2), 424960   ;;  %vm1176_vm1 = vcmask (!%p141_p2), 457728  }
   0xa   : > { %s1568_s26 = smov (!%p141_p2), 28   ;;  %s1569_s27 = smov (!%p141_p2), 40  }
   0xb   : > { %s1570_s28 = smov (!%p141_p2), 44   ;;  %s1571_s29 = smov (!%p141_p2), 48  }
   0xc   : > { %s1572_s30 = smov (!%p141_p2), 52   ;;  %s1573_s4 = smov (!%p141_p2), 56  }
   0xd   : > { %s2183_s13 = smov (!%p167_p3, %s1346_s13), 1  ;;  %s1574_s5 = smov 60  }
   0xe   : > { %s1492_s14 = smul.u32 288, %s2183_s13  ;;  %s1352_s8 = sshll.u32 %s2183_s13, 2 }
   0xf   : > { %s175_s11 = scalar_lea.vmem %s2178_s2, %s1352_s8 }
  0x10   : > { %s1611_s17 = scalar_lea.vmem %s2176_s0, %s1492_s14  ;;  %s1353_s14 = sshll.u32 %s2183_s13, 3 }
  0x11   : > { %v1354_v0 = vld [vmem:[%s1611_s17 + $0x48] sm:$0xf]  ;;  %v1356_v1 = vld [vmem:[%s1611_s17 + $0x50] sm:$0xf]  ;;  %v1616_v2 = vld [vmem:[%s1611_s17 + $0x58] sm:$0xf] }
  0x12   : > { %v362_v3 = vshrl.u32 %v1356_v1, 16  ;;  %v365_v4 = vshll.u32 %v1356_v1, 16  ;;  %v1424_v5 = vcombine.low %v1354_v0, %v1356_v1  ;;  %v348_v6 = vshrl.u32 %v1354_v0, 16  ;;  %v183_v7 = vld [vmem:[%s1611_s17 + $0x8] sm:$0xf] }
  0x13   : > { %v351_v8 = vshll.u32 %v1354_v0, 16  ;;  %v376_v9 = vshrl.u32 %v1616_v2, 16  ;;  %v379_v10 = vshll.u32 %v1616_v2, 16  ;;  %v1432_v11 = vcombine.low %v1356_v1, %v1616_v2  ;;  %v185_v12 = vld [vmem:[%s1611_s17 + $0x10] sm:$0xf] }
  0x14   : > { %v1623_v13 = vrot.slane %v362_v3, 4  ;;  %v1625_v14 = vrot.slane %v365_v4, 5  ;;  %850 = vrot.lane.b32.xlu1 %v1424_v5, %s1560_s18  ;;  %v350_v15 = vrot.slane %v348_v6, 4  ;;  %v231_v16 = vshrl.u32 %v185_v12, 16  ;;  %v1372_v17 = vld [vmem:[%s1611_s17 + $0x90] sm:$0xf] }
  0x15   : > { %v353_v18 = vrot.slane %v351_v8, 5  ;;  %v234_v19 = vshll.u32 %v185_v12, 16  ;;  %v1416_v20 = vcombine.low %v183_v7, %v185_v12  ;;  %v217_v21 = vshrl.u32 %v183_v7, 16  ;;  %v1630_v22 = vld [vmem:[%s1611_s17 + $0x98] sm:$0xf] }
  0x16   : > { %v233_v23 = vrot.slane %v231_v16, 4  ;;  %v220_v24 = vshll.u32 %v183_v7, 16  ;;  %v493_v25 = vshrl.u32 %v1372_v17, 16  ;;  %v496_v26 = vshll.u32 %v1372_v17, 16  ;;  %v1633_v27 = vld [vmem:[%s1611_s17] sm:$0xf] }
  0x17   : > { %v354_v28 = vor.u32 %v353_v18, %v350_v15  ;;  %v236_v29 = vrot.slane %v234_v19, 5  ;;  %809 = vrot.lane.b32.xlu0 %v1416_v20, %s1561_s19  ;;  %v219_v30 = vrot.slane %v217_v21, 4  ;;  %v507_v31 = vshrl.u32 %v1630_v22, 16  ;;  %v182_v32 = vld [vmem:[%s1611_s17 + $0x4] sm:$0x1] }
  0x18   : > { %884 = vrot.lane.b32.xlu1 %v1432_v11, %s1562_s20  ;;  %v222_v33 = vrot.slane %v220_v24, 5  ;;  %v495_v34 = vrot.slane %v493_v25, 4  ;;  %v498_v35 = vrot.slane %v496_v26, 5  ;;  %v510_v36 = vshll.u32 %v1630_v22, 16  ;;  %v184_v37 = vld [vmem:[%s1611_s17 + $0xc] sm:$0x1] }
  0x19   : > { %v355_v38 = vrot.slane %v354_v28, 4  ;;  %v1440_v39 = vcombine.low %v1372_v17, %v1630_v22  ;;  %v203_v40 = vshrl.u32 %v1633_v27, 16  ;;  %v206_v41 = vshll.u32 %v1633_v27, 16  ;;  %v186_v42 = vld [vmem:[%s1611_s17 + $0x14] sm:$0x1] }
  0x1a   : > { %v212_v43 = vshll.u32 %v182_v32, 16  ;;  %v223_v44 = vor.u32 %v222_v33, %v219_v30  ;;  %v226_v45 = vshll.u32 %v184_v37, 16  ;;  %v237_v46 = vor.u32 %v236_v29, %v233_v23  ;;  %v1355_v47 = vld [vmem:[%s1611_s17 + $0x4c] sm:$0x1]  ;;  %v1357_v48 = vld [vmem:[%s1611_s17 + $0x54] sm:$0x1] }
  0x1b   : > { %v205_v50 = vrot.slane %v203_v40, 4  ;;  %v208_v51 = vrot.slane %v206_v41, 5  ;;  %v240_v52 = vshll.u32 %v186_v42, 16  ;;  %v357_v53 = vshll.u32 %v1355_v47, 16  ;;  %v1373_v54 = vld [vmem:[%s1611_s17 + $0x94] sm:$0x1] }
  0x1c   : > { %925 = vrot.lane.b32.xlu1 %v1440_v39, %s1563_s21  ;;  %v214_v55 = vrot.slane %v212_v43, 5  ;;  %v224_v56 = vrot.slane %v223_v44, 4  ;;  %v228_v57 = vrot.slane %v226_v45, 5  ;;  %v238_v58 = vrot.slane %v237_v46, 4  ;;  %v1375_v1 = vld [vmem:[%s1611_s17 + $0x9c] sm:$0x1] }
  0x1d   : > { %v209_v59 = vor.u32 %v208_v51, %v205_v50  ;;  %v242_v60 = vrot.slane %v240_v52, 5  ;;  %v359_v61 = vrot.slane %v357_v53, 5  ;;  %v368_v62 = vor.u32 %v1625_v14, %v1623_v13  ;;  %v1359_v15 = vld [vmem:[%s1611_s17 + $0x5c] sm:$0x1]  ;;  %v1671_v20 = vld [vmem:[%s1611_s17 + $0xa0] sm:$0xf] }
  0x1e   : > { %v229_v63 = vsel %vm1649_vm2, %v224_v56, %v228_v57  ;;  %v371_v0 = vshll.u32 %v1357_v48, 16  ;;  %v499_v3 = vor.u32 %v498_v35, %v495_v34  ;;  %v502_v4 = vshll.u32 %v1373_v54, 16  ;;  %v1679_v25 = vld [vmem:[%s1611_s17 + $0x18] sm:$0xf]  ;;  %v1377_v39 = vld [vmem:[%s1611_s17 + $0xa4] sm:$0x1] }
  0x1f   : > { %v210_v5 = vrot.slane %v209_v59, 4  ;;  %v1662_v6 = vsel %vm1649_vm2, %v238_v58, %v242_v60  ;;  %v360_v7 = vsel %vm1649_vm2, %v355_v38, %v359_v61  ;;  %v369_v8 = vrot.slane %v368_v62, 4  ;;  %v1693_v43 = vld [vmem:[%s1611_s17 + $0x20] sm:$0xf]  ;;  %v1701_v53 = vld [vmem:[%s1611_s17 + $0xd8] sm:$0xf] }
  0x20   : > { %v1420_v11 = vcombine.low %v229_v63, %v1662_v6  ;;  %v373_v12 = vrot.slane %v371_v0, 5  ;;  %v500_v13 = vrot.slane %v499_v3, 4  ;;  %v504_v14 = vrot.slane %v502_v4, 5  ;;  %v1704_v54 = vld [vmem:[%s1611_s17 + $0xe0] sm:$0xf] }
  0x21   : > { %v215_v16 = vsel %vm1649_vm2, %v210_v5, %v214_v55  ;;  %v509_v17 = vrot.slane %v507_v31, 4  ;;  %v512_v18 = vrot.slane %v510_v36, 5  ;;  %v516_v19 = vshll.u32 %v1375_v1, 16  ;;  %v188_v31 = vld [vmem:[%s1611_s17 + $0x1c] sm:$0x1] }
  0x22   : > { %v1412_v21 = vcombine.low %v215_v16, %v229_v63  ;;  %822 = vrot.lane.b32.xlu1 %v1420_v11, %s1564_s22  ;;  %v374_v23 = vsel %vm1649_vm2, %v369_v8, %v373_v12  ;;  %v378_v24 = vrot.slane %v376_v9, 4  ;;  %v505_v26 = vsel %vm1649_vm2, %v500_v13, %v504_v14  ;;  %v190_v62 = vld [vmem:[%s1611_s17 + $0x24] sm:$0x1]  ;;  %v1391_v4 = vld [vmem:[%s1611_s17 + $0xdc] sm:$0x1] }
  0x23   : > { %v513_v28 = vor.u32 %v512_v18, %v509_v17  ;;  %v518_v29 = vrot.slane %v516_v19, 5  ;;  %v381_v30 = vrot.slane %v379_v10, 5  ;;  %v1428_v32 = vcombine.low %v360_v7, %v374_v23  ;;  %v1393_v12 = vld [vmem:[%s1611_s17 + $0xe4] sm:$0x1]  ;;  %v1732_v17 = vld [vmem:[%s1611_s17 + $0x60] sm:$0xf] }
  0x24   : > { %795 = vrot.lane.b32.xlu0 %v1412_v21, %s1565_s23  ;;  %v385_v33 = vshll.u32 %v1359_v15, 16  ;;  %v521_v9 = vshrl.u32 %v1671_v20, 16  ;;  %v524_v34 = vshll.u32 %v1671_v20, 16  ;;  %v245_v37 = vshrl.u32 %v1679_v25, 16 }
  0x25   : > { %v514_v35 = vrot.slane %v513_v28, 4  ;;  %v382_v36 = vor.u32 %v381_v30, %v378_v24  ;;  %v248_v38 = vshll.u32 %v1679_v25, 16  ;;  %v254_v40 = vshll.u32 %v188_v31, 16  ;;  %v1737_v30 = vld [vmem:[%s1611_s17 + $0xe8] sm:$0xf] }
  0x26   : > { %v387_v10 = vrot.slane %v385_v33, 5  ;;  %v523_v41 = vrot.slane %v521_v9, 4  ;;  %v526_v42 = vrot.slane %v524_v34, 5  ;;  %v247_v46 = vrot.slane %v245_v37, 4  ;;  %v1361_v37 = vld [vmem:[%s1611_s17 + $0x64] sm:$0x1] }
  0x27   : > { %v519_v44 = vsel %vm1649_vm2, %v514_v35, %v518_v29  ;;  %v383_v45 = vrot.slane %v382_v36, 4  ;;  %v250_v47 = vrot.slane %v248_v38, 5  ;;  %v1448_v50 = vcombine.low %v1630_v22, %v1671_v20 }
  0x28   : > { %870 = vrot.lane.b32.xlu0 %v1428_v32, %s1566_s24  ;;  %v1444_v48 = vcombine.low %v505_v26, %v519_v44  ;;  %v527_v51 = vor.u32 %v526_v42, %v523_v41  ;;  %v530_v52 = vshll.u32 %v1377_v39, 16  ;;  %v256_v57 = vrot.slane %v254_v40, 5  ;;  %v1395_v41 = vld [vmem:[%s1611_s17 + $0xec] sm:$0x1] }
  0x29   : > { %v1708_v55 = vsel %vm1649_vm2, %v383_v45, %v387_v10  ;;  %v251_v56 = vor.u32 %v250_v47, %v247_v46  ;;  %v259_v58 = vshrl.u32 %v1693_v43, 16  ;;  %v262_v61 = vshll.u32 %v1693_v43, 16  ;;  %v1752_v46 = vld [vmem:[%s1611_s17 + $0x68] sm:$0xf] }
  0x2a   : > { %945 = vrot.lane.b32.xlu1 %v1444_v48, %s1567_s25  ;;  %v1436_v22 = vcombine.low %v374_v23, %v1708_v55  ;;  %v528_v59 = vrot.slane %v527_v51, 4  ;;  %v532_v60 = vrot.slane %v530_v52, 5  ;;  %v638_v0 = vshrl.u32 %v1701_v53, 16 }
  0x2b   : > { %v252_v63 = vrot.slane %v251_v56, 4  ;;  %v641_v1 = vshll.u32 %v1701_v53, 16  ;;  %v652_v3 = vshrl.u32 %v1704_v54, 16  ;;  %v1417_v7 = vcombine.low %v1679_v25, %v1693_v43 }
  0x2c   : > { %897 = vrot.lane.b32.xlu0 %v1436_v22, %s1568_s26  ;;  %v1722_v5 = vsel %vm1649_vm2, %v528_v59, %v532_v60  ;;  %v655_v8 = vshll.u32 %v1704_v54, 16  ;;  %v261_v11 = vrot.slane %v259_v58, 4  ;;  %v640_v15 = vrot.slane %v638_v0, 4  ;;  %v1765_v58 = vld [vmem:[%s1611_s17 + $0x28] sm:$0xf] }
  0x2d   : > { %v257_v13 = vsel %vm1649_vm2, %v252_v63, %v256_v57  ;;  %v1452_v14 = vcombine.low %v519_v44, %v1722_v5  ;;  %v643_v16 = vrot.slane %v641_v1, 5  ;;  %v264_v19 = vrot.slane %v262_v61, 5  ;;  %v192_v22 = vld [vmem:[%s1611_s17 + $0x2c] sm:$0x1] }
  0x2e   : > { %959 = vrot.lane.b32.xlu1 %v1448_v50, %s1569_s27  ;;  %v1413_v18 = vcombine.low %v1662_v6, %v257_v13  ;;  %v268_v21 = vshll.u32 %v190_v62, 16  ;;  %v647_v23 = vshll.u32 %v1391_v4, 16  ;;  %v654_v26 = vrot.slane %v652_v3, 4  ;;  %v1363_v63 = vld [vmem:[%s1611_s17 + $0x6c] sm:$0x1] }
  0x2f   : > { %v644_v24 = vor.u32 %v643_v16, %v640_v15  ;;  %v657_v28 = vrot.slane %v655_v8, 5  ;;  %v661_v29 = vshll.u32 %v1393_v12, 16  ;;  %v265_v31 = vor.u32 %v264_v19, %v261_v11 }
  0x30   : > { %797 = vrot.lane.b32.xlu0 %v1413_v18, %s1565_s23  ;;  %v270_v32 = vrot.slane %v268_v21, 5  ;;  %v649_v33 = vrot.slane %v647_v23, 5  ;;  %v390_v9 = vshrl.u32 %v1732_v17, 16  ;;  %v393_v36 = vshll.u32 %v1732_v17, 16  ;;  %v1779_v18 = vld [vmem:[%s1611_s17 + $0x30] sm:$0xf] }
  0x31   : > { %v645_v6 = vrot.slane %v644_v24, 4  ;;  %v658_v34 = vor.u32 %v657_v28, %v654_v26  ;;  %v663_v35 = vrot.slane %v661_v29, 5  ;;  %v1456_v38 = vcombine.low %v1701_v53, %v1704_v54  ;;  %v1789_v24 = vld [vmem:[%s1611_s17 + $0xa8] sm:$0xf] }
  0x32   : > { %972 = vrot.lane.b32.xlu1 %v1452_v14, %s1570_s28  ;;  %v266_v39 = vrot.slane %v265_v31, 4  ;;  %v666_v10 = vshrl.u32 %v1737_v30, 16  ;;  %v669_v40 = vshll.u32 %v1737_v30, 16  ;;  %v392_v45 = vrot.slane %v390_v9, 4  ;;  %v194_v9 = vld [vmem:[%s1611_s17 + $0x34] sm:$0x1] }
  0x33   : > { %v650_v42 = vsel %vm1649_vm2, %v645_v6, %v649_v33  ;;  %v659_v44 = vrot.slane %v658_v34, 4  ;;  %v395_v48 = vrot.slane %v393_v36, 5  ;;  %v399_v50 = vshll.u32 %v1361_v37, 16  ;;  %v1379_v37 = vld [vmem:[%s1611_s17 + $0xac] sm:$0x1] }
  0x34   : > { %811 = vrot.lane.b32.xlu0 %v1417_v7, %s1561_s19  ;;  %v1757_v47 = vsel %vm1649_vm2, %v266_v39, %v270_v32  ;;  %v668_v51 = vrot.slane %v666_v10, 4  ;;  %v671_v56 = vrot.slane %v669_v40, 5  ;;  %v675_v57 = vshll.u32 %v1395_v41, 16  ;;  %v1808_v40 = vld [vmem:[%s1611_s17 + $0x70] sm:$0xf] }
  0x35   : > { %v1421_v52 = vcombine.low %v257_v13, %v1757_v47  ;;  %v1762_v53 = vsel %vm1649_vm2, %v659_v44, %v663_v35  ;;  %v396_v60 = vor.u32 %v395_v48, %v392_v45  ;;  %v401_v61 = vrot.slane %v399_v50, 5 }
  0x36   : > { %1000 = vrot.lane.b32.xlu1 %v1456_v38, %s1571_s29  ;;  %v1460_v59 = vcombine.low %v650_v42, %v1762_v53  ;;  %v404_v62 = vshrl.u32 %v1752_v46, 16  ;;  %v1425_v0 = vcombine.low %v1616_v2, %v1732_v17  ;;  %v672_v1 = vor.u32 %v671_v56, %v668_v51 }
  0x37   : > { %v677_v3 = vrot.slane %v675_v57, 5  ;;  %v407_v4 = vshll.u32 %v1752_v46, 16  ;;  %v397_v7 = vrot.slane %v396_v60, 4  ;;  %v273_v8 = vshrl.u32 %v1765_v58, 16 }
  0x38   : > { %824 = vrot.lane.b32.xlu0 %v1421_v52, %s1564_s22  ;;  %v276_v11 = vshll.u32 %v1765_v58, 16  ;;  %v282_v12 = vshll.u32 %v192_v22, 16  ;;  %v673_v13 = vrot.slane %v672_v1, 4  ;;  %v406_v14 = vrot.slane %v404_v62, 4  ;;  %v1816_v52 = vld [vmem:[%s1611_s17 + $0xb0] sm:$0xf] }
  0x39   : > { %v409_v15 = vrot.slane %v407_v4, 5  ;;  %v413_v16 = vshll.u32 %v1363_v63, 16  ;;  %v1464_v2 = vcombine.low %v1704_v54, %v1737_v30  ;;  %v1786_v19 = vsel %vm1649_vm2, %v397_v7, %v401_v61  ;;  %v1365_v22 = vld [vmem:[%s1611_s17 + $0x74] sm:$0x1] }
  0x3a   : > { %1020 = vrot.lane.b32.xlu1 %v1460_v59, %s1572_s30  ;;  %v275_v21 = vrot.slane %v273_v8, 4  ;;  %v278_v23 = vrot.slane %v276_v11, 5  ;;  %v1793_v26 = vsel %vm1649_vm2, %v673_v13, %v677_v3  ;;  %v284_v28 = vrot.slane %v282_v12, 5  ;;  %v1381_v11 = vld [vmem:[%s1611_s17 + $0xb4] sm:$0x1] }
  0x3b   : > { %v410_v29 = vor.u32 %v409_v15, %v406_v14  ;;  %v1429_v54 = vcombine.low %v1708_v55, %v1786_v19  ;;  %v287_v32 = vshrl.u32 %v1779_v18, 16  ;;  %v290_v33 = vshll.u32 %v1779_v18, 16  ;;  %v1837_v14 = vld [vmem:[%s1611_s17 + $0xf0] sm:$0xf] }
  0x3c   : > { %852 = vrot.lane.b32.xlu0 %v1425_v0, %s1560_s18  ;;  %v279_v31 = vor.u32 %v278_v23, %v275_v21  ;;  %v415_v34 = vrot.slane %v413_v16, 5  ;;  %v535_v35 = vshrl.u32 %v1789_v24, 16  ;;  %v538_v36 = vshll.u32 %v1789_v24, 16 }
  0x3d   : > { %v411_v6 = vrot.slane %v410_v29, 4  ;;  %v1468_v55 = vcombine.low %v1762_v53, %v1793_v26  ;;  %v289_v39 = vrot.slane %v287_v32, 4  ;;  %v292_v10 = vrot.slane %v290_v33, 5 }
  0x3e   : > { %1034 = vrot.lane.b32.xlu1 %v1464_v2, %s1573_s4  ;;  %v280_v38 = vrot.slane %v279_v31, 4  ;;  %v296_v41 = vshll.u32 %v194_v9, 16  ;;  %v537_v42 = vrot.slane %v535_v35, 4  ;;  %v540_v44 = vrot.slane %v538_v36, 5  ;;  %v1367_v35 = vld [vmem:[%s1611_s17 + $0x7c] sm:$0x1] }
  0x3f   : > { %v1433_v45 = vcombine.low %v1732_v17, %v1752_v46  ;;  %v293_v50 = vor.u32 %v292_v10, %v289_v39  ;;  %v544_v51 = vshll.u32 %v1379_v37, 16  ;;  %v1820_v53 = vsel %vm1649_vm2, %v411_v6, %v415_v34 }
  0x40   : > { %872 = vrot.lane.b32.xlu0 %v1429_v54, %s1566_s24  ;;  %v285_v48 = vsel %vm1649_vm2, %v280_v38, %v284_v28  ;;  %v541_v56 = vor.u32 %v540_v44, %v537_v42  ;;  %v418_v57 = vshrl.u32 %v1808_v40, 16  ;;  %v298_v60 = vrot.slane %v296_v41, 5  ;;  %v1862_v38 = vld [vmem:[%s1611_s17 + $0xb8] sm:$0xf] }
  0x41   : > { %v1414_v17 = vcombine.low %v1757_v47, %v285_v48  ;;  %v294_v59 = vrot.slane %v293_v50, 4  ;;  %v421_v61 = vshll.u32 %v1808_v40, 16  ;;  %v546_v63 = vrot.slane %v544_v51, 5  ;;  %v1833_v47 = vld [vmem:[%s1611_s17 + $0x78] sm:$0xf] }
  0x42   : > { %1047 = vrot.lane.b32.xlu1 %v1468_v55, %s1574_s5  ;;  %v542_v62 = vrot.slane %v541_v56, 4  ;;  %v549_v0 = vshrl.u32 %v1816_v52, 16  ;;  %v552_v1 = vshll.u32 %v1816_v52, 16  ;;  %v1437_v3 = vcombine.low %v1786_v19, %v1820_v53  ;;  %v1397_v55 = vld [vmem:[%s1611_s17 + $0xf4] sm:$0x1] }
  0x43   : > { %v420_v4 = vrot.slane %v418_v57, 4  ;;  %v423_v7 = vrot.slane %v421_v61, 5  ;;  %v427_v8 = vshll.u32 %v1365_v22, 16  ;;  %v1418_v15 = vcombine.low %v1765_v58, %v1779_v18  ;;  %v1870_v42 = vld [vmem:[%s1611_s17 + $0xf8] sm:$0xf] }
  0x44   : > { %886 = vrot.lane.b32.xlu0 %v1433_v45, %s1562_s20  ;;  %v551_v12 = vrot.slane %v549_v0, 4  ;;  %v554_v13 = vrot.slane %v552_v1, 5  ;;  %v1441_v16 = vcombine.low %v1671_v20, %v1789_v24  ;;  %v1846_v19 = vsel %vm1649_vm2, %v294_v59, %v298_v60 }
  0x45   : > { %v424_v2 = vor.u32 %v423_v7, %v420_v4  ;;  %v1850_v21 = vsel %vm1649_vm2, %v542_v62, %v546_v63  ;;  %v432_v23 = vshrl.u32 %v1833_v47, 16  ;;  %v435_v28 = vshll.u32 %v1833_v47, 16  ;;  %v1891_v63 = vld [vmem:[%s1611_s17 + $0x38] sm:$0xf] }
  0x46   : > { %799 = vrot.lane.b32.xlu1 %v1414_v17, %s1565_s23  ;;  %v429_v29 = vrot.slane %v427_v8, 5  ;;  %v558_v20 = vshll.u32 %v1381_v11, 16  ;;  %v680_v54 = vshrl.u32 %v1837_v14, 16  ;;  %v683_v31 = vshll.u32 %v1837_v14, 16  ;;  %v1399_v11 = vld [vmem:[%s1611_s17 + $0xfc] sm:$0x1] }
  0x47   : > { %v425_v32 = vrot.slane %v424_v2, 4  ;;  %v555_v33 = vor.u32 %v554_v13, %v551_v12  ;;  %v434_v9 = vrot.slane %v432_v23, 4  ;;  %v437_v6 = vrot.slane %v435_v28, 5  ;;  %v1900_v12 = vld [vmem:[%s1611_s17 + $0xc0] sm:$0xf] }
  0x48   : > { %899 = vrot.lane.b32.xlu0 %v1437_v3, %s1568_s26  ;;  %v1422_v34 = vcombine.low %v285_v48, %v1846_v19  ;;  %v682_v36 = vrot.slane %v680_v54, 4  ;;  %v685_v37 = vrot.slane %v683_v31, 5  ;;  %v1445_v39 = vcombine.low %v1722_v5, %v1850_v21 }
  0x49   : > { %v1426_v10 = vcombine.low %v1752_v46, %v1808_v40  ;;  %v560_v41 = vrot.slane %v558_v20, 5  ;;  %v1874_v44 = vsel %vm1649_vm2, %v425_v32, %v429_v29  ;;  %v556_v45 = vrot.slane %v555_v33, 4 }
  0x4a   : > { %813 = vrot.lane.b32.xlu1 %v1418_v15, %s1561_s19  ;;  %v438_v48 = vor.u32 %v437_v6, %v434_v9  ;;  %v441_v50 = vshll.u32 %v1367_v35, 16  ;;  %v686_v51 = vor.u32 %v685_v37, %v682_v36  ;;  %v689_v56 = vshll.u32 %v1397_v55, 16  ;;  %v196_v9 = vld [vmem:[%s1611_s17 + $0x3c] sm:$0x1]  ;;  %v1922_v6 = vld [vmem:[%s1611_s17 + $0x40] sm:$0xf] }
  0x4b   : > { %v563_v5 = vshrl.u32 %v1862_v38, 16  ;;  %v566_v46 = vshll.u32 %v1862_v38, 16  ;;  %v694_v57 = vshrl.u32 %v1870_v42, 16  ;;  %v697_v22 = vshll.u32 %v1870_v42, 16  ;;  %v1930_v55 = vld [vmem:[%s1611_s17 + $0x100] sm:$0xf] }
  0x4c   : > { %927 = vrot.lane.b32.xlu0 %v1441_v16, %s1563_s21  ;;  %v1449_v17 = vcombine.low %v1789_v24, %v1816_v52  ;;  %v1430_v59 = vcombine.low %v1820_v53, %v1874_v44  ;;  %v1888_v60 = vsel %vm1649_vm2, %v556_v45, %v560_v41  ;;  %v439_v61 = vrot.slane %v438_v48, 4  ;;  %v1383_v24 = vld [vmem:[%s1611_s17 + $0xbc] sm:$0x1] }
  0x4d   : > { %v443_v62 = vrot.slane %v441_v50, 5  ;;  %v687_v0 = vrot.slane %v686_v51, 4  ;;  %v691_v1 = vrot.slane %v689_v56, 5  ;;  %v565_v3 = vrot.slane %v563_v5, 4  ;;  %v1385_v50 = vld [vmem:[%s1611_s17 + $0xc4] sm:$0x1] }
  0x4e   : > { %826 = vrot.lane.b32.xlu1 %v1422_v34, %s1564_s22  ;;  %v568_v4 = vrot.slane %v566_v46, 5  ;;  %v696_v7 = vrot.slane %v694_v57, 4  ;;  %v699_v8 = vrot.slane %v697_v22, 5  ;;  %v1453_v53 = vcombine.low %v1850_v21, %v1888_v60 }
  0x4f   : > { %v301_v13 = vshrl.u32 %v1891_v63, 16  ;;  %v304_v15 = vshll.u32 %v1891_v63, 16  ;;  %v1434_v16 = vcombine.low %v1808_v40, %v1833_v47  ;;  %v1909_v2 = vsel %vm1649_vm2, %v439_v61, %v443_v62 }
  0x50   : > { %947 = vrot.lane.b32.xlu0 %v1445_v39, %s1567_s25  ;;  %v1913_v21 = vsel %vm1649_vm2, %v687_v0, %v691_v1  ;;  %v569_v23 = vor.u32 %v568_v4, %v565_v3  ;;  %v572_v28 = vshll.u32 %v1383_v24, 16  ;;  %v700_v29 = vor.u32 %v699_v8, %v696_v7  ;;  %v198_v1 = vld [vmem:[%s1611_s17 + $0x44] sm:$0x1]  ;;  %v1954_v4 = vld [vmem:[%s1611_s17 + $0x80] sm:$0xf] }
  0x51   : > { %v703_v20 = vshll.u32 %v1399_v11, 16  ;;  %v577_v54 = vshrl.u32 %v1900_v12, 16  ;;  %v580_v31 = vshll.u32 %v1900_v12, 16  ;;  %v1457_v40 = vcombine.low %v1737_v30, %v1837_v14  ;;  %v1401_v7 = vld [vmem:[%s1611_s17 + $0x104] sm:$0x1] }
  0x52   : > { %854 = vrot.lane.b32.xlu1 %v1426_v10, %s1560_s18  ;;  %v303_v32 = vrot.slane %v301_v13, 4  ;;  %v306_v33 = vrot.slane %v304_v15, 5  ;;  %v1438_v34 = vcombine.low %v1874_v44, %v1909_v2  ;;  %v1461_v35 = vcombine.low %v1793_v26, %v1913_v21  ;;  %v1961_v8 = vld [vmem:[%s1611_s17 + $0x108] sm:$0xf] }
  0x53   : > { %v570_v36 = vrot.slane %v569_v23, 4  ;;  %v574_v37 = vrot.slane %v572_v28, 5  ;;  %v701_v39 = vrot.slane %v700_v29, 4  ;;  %v705_v30 = vrot.slane %v703_v20, 5 }
  0x54   : > { %961 = vrot.lane.b32.xlu0 %v1449_v17, %s1569_s27  ;;  %v579_v10 = vrot.slane %v577_v54, 4  ;;  %v582_v41 = vrot.slane %v580_v31, 5  ;;  %v307_v45 = vor.u32 %v306_v33, %v303_v32  ;;  %v310_v48 = vshll.u32 %v196_v9, 16  ;;  %v1981_v33 = vld [vmem:[%s1611_s17 + $0xc8] sm:$0xf] }
  0x55   : > { %v315_v51 = vshrl.u32 %v1922_v6, 16  ;;  %v318_v44 = vshll.u32 %v1922_v6, 16  ;;  %v708_v26 = vshrl.u32 %v1930_v55, 16  ;;  %v711_v56 = vshll.u32 %v1930_v55, 16 }
  0x56   : > { %874 = vrot.lane.b32.xlu1 %v1430_v59, %s1566_s24  ;;  %v1442_v5 = vcombine.low %v1816_v52, %v1862_v38  ;;  %v1465_v46 = vcombine.low %v1837_v14, %v1870_v42  ;;  %v1945_v57 = vsel %vm1649_vm2, %v570_v36, %v574_v37  ;;  %v1949_v22 = vsel %vm1649_vm2, %v701_v39, %v705_v30 }
  0x57   : > { %v583_v17 = vor.u32 %v582_v41, %v579_v10  ;;  %v586_v59 = vshll.u32 %v1385_v50, 16  ;;  %v308_v61 = vrot.slane %v307_v45, 4  ;;  %v312_v62 = vrot.slane %v310_v48, 5  ;;  %v1990_v45 = vld [vmem:[%s1611_s17 + $0x88] sm:$0xf] }
  0x58   : > { %974 = vrot.lane.b32.xlu0 %v1453_v53, %s1570_s28  ;;  %v317_v52 = vrot.slane %v315_v51, 4  ;;  %v320_v0 = vrot.slane %v318_v44, 5  ;;  %v710_v14 = vrot.slane %v708_v26, 4  ;;  %v713_v3 = vrot.slane %v711_v56, 5  ;;  %v1999_v26 = vld [vmem:[%s1611_s17 + $0xd0] sm:$0xf] }
  0x59   : > { %v1446_v24 = vcombine.low %v1888_v60, %v1945_v57  ;;  %v1469_v53 = vcombine.low %v1913_v21, %v1949_v22  ;;  %v584_v11 = vrot.slane %v583_v17, 4  ;;  %v588_v13 = vrot.slane %v586_v59, 5 }
  0x5a   : > { %888 = vrot.lane.b32.xlu1 %v1434_v16, %s1562_s20  ;;  %v324_v15 = vshll.u32 %v198_v1, 16  ;;  %v313_v16 = vsel %vm1649_vm2, %v308_v61, %v312_v62  ;;  %v321_v23 = vor.u32 %v320_v0, %v317_v52  ;;  %v446_v28 = vshrl.u32 %v1954_v4, 16  ;;  %v1387_v61 = vld [vmem:[%s1611_s17 + $0xcc] sm:$0x1] }
  0x5b   : > { %v449_v60 = vshll.u32 %v1954_v4, 16  ;;  %v714_v29 = vor.u32 %v713_v3, %v710_v14  ;;  %v717_v20 = vshll.u32 %v1401_v7, 16  ;;  %v722_v21 = vshrl.u32 %v1961_v8, 16  ;;  %v2015_v3 = vld [vmem:[%s1611_s17 + $0x110] sm:$0xf] }
  0x5c   : > { %1002 = vrot.lane.b32.xlu0 %v1457_v40, %s1571_s29  ;;  %v725_v54 = vshll.u32 %v1961_v8, 16  ;;  %v1450_v31 = vcombine.low %v1862_v38, %v1900_v12  ;;  %v1415_v40 = vcombine.low %v1846_v19, %v313_v16  ;;  %v1978_v32 = vsel %vm1649_vm2, %v584_v11, %v588_v13  ;;  %v1403_v38 = vld [vmem:[%s1611_s17 + $0x10c] sm:$0x1] }
  0x5d   : > { %v322_v9 = vrot.slane %v321_v23, 4  ;;  %v448_v36 = vrot.slane %v446_v28, 4  ;;  %v451_v37 = vrot.slane %v449_v60, 5  ;;  %v715_v39 = vrot.slane %v714_v29, 4  ;;  %v1371_v28 = vld [vmem:[%s1611_s17 + $0x8c] sm:$0x1] }
  0x5e   : > { %901 = vrot.lane.b32.xlu1 %v1438_v34, %s1568_s26  ;;  %v326_v34 = vrot.slane %v324_v15, 5  ;;  %v719_v30 = vrot.slane %v717_v20, 5  ;;  %v724_v10 = vrot.slane %v722_v21, 4  ;;  %v727_v19 = vrot.slane %v725_v54, 5  ;;  %v1389_v21 = vld [vmem:[%s1611_s17 + $0xd4] sm:$0x1] }
  0x5f   : > { %v1454_v41 = vcombine.low %v1945_v57, %v1978_v32  ;;  %v591_v48 = vshrl.u32 %v1981_v33, 16  ;;  %v594_v50 = vshll.u32 %v1981_v33, 16  ;;  %v1419_v51 = vcombine.low %v1891_v63, %v1922_v6 }
  0x60   : > { %1022 = vrot.lane.b32.xlu0 %v1461_v35, %s1572_s30  ;;  %v1369_v35 = vld [vmem:[%s1611_s17 + $0x84] sm:$0x1]  ;;  %v1458_v44 = vcombine.low %v1870_v42, %v1930_v55  ;;  %v327_v56 = vsel %vm1649_vm2, %v322_v9, %v326_v34  ;;  %v731_v57 = vshll.u32 %v1403_v38, 16  ;;  %v2006_v17 = vsel %vm1649_vm2, %v715_v39, %v719_v30 }
  0x61   : > { %v728_v59 = vor.u32 %v727_v19, %v724_v10  ;;  %v460_v6 = vshrl.u32 %v1990_v45, 16  ;;  %v463_v42 = vshll.u32 %v1990_v45, 16  ;;  %v593_v62 = vrot.slane %v591_v48, 4 }
  0x62   : > { %929 = vrot.lane.b32.xlu1 %v1442_v5, %s1563_s21  ;;  %v452_v5 = vor.u32 %v451_v37, %v448_v36  ;;  %v596_v52 = vrot.slane %v594_v50, 5  ;;  %v605_v0 = vshrl.u32 %v1999_v26, 16  ;;  %v608_v1 = vshll.u32 %v1999_v26, 16 }
  0x63   : > { %v1423_v14 = vcombine.low %v313_v16, %v327_v56  ;;  %v733_v11 = vrot.slane %v731_v57, 5  ;;  %v729_v13 = vrot.slane %v728_v59, 4  ;;  %v462_v15 = vrot.slane %v460_v6, 4 }
  0x64   : > { %1036 = vrot.lane.b32.xlu0 %v1465_v46, %s1573_s4  ;;  %v455_v46 = vshll.u32 %v1369_v35, 16  ;;  %v453_v7 = vrot.slane %v452_v5, 4  ;;  %v465_v23 = vrot.slane %v463_v42, 5  ;;  %v600_v60 = vshll.u32 %v1387_v61, 16  ;;  %v2033_v35 = vld [vmem:[%s1611_s17 + $0x118] sm:$0xf] }
  0x65   : > { %v597_v16 = vor.u32 %v596_v52, %v593_v62  ;;  %v607_v29 = vrot.slane %v605_v0, 4  ;;  %v610_v20 = vrot.slane %v608_v1, 5  ;;  %v736_v54 = vshrl.u32 %v2015_v3, 16  ;;  %v1407_v0 = vld [vmem:[%s1611_s17 + $0x11c] sm:$0x1] }
  0x66   : > { %949 = vrot.lane.b32.xlu1 %v1446_v24, %s1567_s25  ;;  %v1462_v24 = vcombine.low %v1949_v22, %v2006_v17  ;;  %v1427_v22 = vcombine.low %v1833_v47, %v1954_v4  ;;  %v469_v34 = vshll.u32 %v1371_v28, 16  ;;  %v734_v36 = vsel %vm1649_vm2, %v729_v13, %v733_v11 }
  0x67   : > { %v466_v37 = vor.u32 %v465_v23, %v462_v15  ;;  %v614_v39 = vshll.u32 %v1389_v21, 16  ;;  %v598_v30 = vrot.slane %v597_v16, 4  ;;  %v602_v38 = vrot.slane %v600_v60, 5 }
  0x68   : > { %1049 = vrot.lane.b32.xlu0 %v1469_v53, %s1574_s5  ;;  %v457_v53 = vrot.slane %v455_v46, 5  ;;  %v611_v10 = vor.u32 %v610_v20, %v607_v29  ;;  %v738_v47 = vrot.slane %v736_v54, 4  ;;  %v1575_v19 = vmov 0.0   ;;  %v1550_v54 = vld [vmem:[%s1611_s17 + $0x8] sm:$0xf] }
  0x69   : > { %1480 = vmatprep.subr.bf16.mxu0 %v1575_v19  ;;  %v750_v48 = vshrl.u32 %v2033_v35, 16  ;;  %v753_v50 = vshll.u32 %v2033_v35, 16  ;;  %v467_v56 = vrot.slane %v466_v37, 4  ;;  %v471_v5 = vrot.slane %v469_v34, 5  ;;  %1488 = vmatprep.mubr.msk.bf16.mxu0 %vm1576_vm3, %v1575_v19 }
  0x6a   : > { %963 = vrot.lane.b32.xlu1 %v1450_v31, %s1569_s27  ;;  %v739_v31 = vshll.u32 %v2015_v3, 16  ;;  %v458_v9 = vsel %vm1649_vm2, %v453_v7, %v457_v53  ;;  %v1470_v46 = vcombine.low %v2006_v17, %v734_v36  ;;  %v603_v57 = vsel %vm1649_vm2, %v598_v30, %v602_v38 }
  0x6b   : > { %v616_v59 = vrot.slane %v614_v39, 5  ;;  %v612_v42 = vrot.slane %v611_v10, 4  ;;  %v752_v62 = vrot.slane %v750_v48, 4  ;;  %v755_v52 = vrot.slane %v753_v50, 5 }
  0x6c   : > { %801 = vrot.lane.b32.xlu0 %v1415_v40, %s1565_s23  ;;  %v1466_v40 = vcombine.low %v1930_v55, %v1961_v8  ;;  %v1405_v55 = vld [vmem:[%s1611_s17 + $0x114] sm:$0x1]  ;;  %v472_v1 = vsel %vm1649_vm2, %v467_v56, %v471_v5  ;;  %v1447_v17 = vcombine.low %v1978_v32, %v603_v57  ;;  %v759_v11 = vshll.u32 %v1407_v0, 16 }
  0x6d   : > { %v745_v6 = vshll.u32 %v1405_v55, 16  ;;  %v756_v53 = vor.u32 %v755_v52, %v752_v62  ;;  %v1439_v13 = vcombine.low %v458_v9, %v472_v1  ;;  %v1443_v32 = vcombine.low %v1900_v12, %v1981_v33 }
  0x6e   : > { %976 = vrot.lane.b32.xlu1 %v1454_v41, %s1570_s28  ;;  %v741_v41 = vrot.slane %v739_v31, 5  ;;  %v761_v23 = vrot.slane %v759_v11, 5  ;;  %v1451_v29 = vcombine.low %v1981_v33, %v1999_v26  ;;  %v1459_v12 = vcombine.low %v1961_v8, %v2015_v3 }
  0x6f   : > { %v757_v15 = vrot.slane %v756_v53, 4  ;;  %v1467_v33 = vcombine.low %v2015_v3, %v2033_v35  ;;  %v1408_v31 = vcombine.low %v1633_v27, %v1550_v54  ;;  %vm1195_vm3 = vcmask 523264  }
  0x70   : > { %815 = vrot.lane.b32.xlu0 %v1419_v51, %s1561_s19  ;;  %v1411_v51 = vcombine.low %v1779_v18, %v1891_v63  ;;  %v742_v61 = vor.u32 %v741_v41, %v738_v47 }
  0x71   : > { %v762_v16 = vsel %vm1649_vm2, %v757_v15, %v761_v23  ;;  %v1551_v15 = vld [vmem:[%s1611_s17 + $0x10] sm:$0xf]  ;;  %s179_s17 = scalar_lea.vmem %s2179_s3, %s1353_s14 }
  0x72   : > { %1004 = vrot.lane.b32.xlu1 %v1458_v44, %s1571_s29  ;;  %v1431_v44 = vcombine.low %v1909_v2, %v458_v9  ;;  %v1435_v2 = vcombine.low %v1954_v4, %v1990_v45  ;;  %v743_v7 = vrot.slane %v742_v61, 4  ;;  %v1409_v23 = vcombine.low %v1551_v15, %v1679_v25 }
  0x74   : > { %828 = vrot.lane.b32.xlu0 %v1423_v14, %s1564_s22  ;;  %v747_v14 = vrot.slane %v745_v6, 5 }
  0x76   : > { %1024 = vrot.lane.b32.xlu1 %v1462_v24, %s1572_s30  ;;  %v617_v24 = vsel %vm1649_vm2, %v612_v42, %v616_v59  ;;  %v748_v45 = vsel %vm1649_vm2, %v743_v7, %v747_v14  ;;  %vm1185_vm2 = vcmask 490496  }
  0x77   : > { %v1455_v4 = vcombine.low %v603_v57, %v617_v24  ;;  %v1463_v60 = vcombine.low %v734_v36, %v748_v45  ;;  %v1471_v21 = vcombine.low %v748_v45, %v762_v16 }
  0x78   : > { %856 = vrot.lane.b32.xlu0 %v1427_v22, %s1560_s18 }
  0x7a   : > { %1038 = vrot.lane.b32.xlu1 %v1466_v40, %s1573_s4 }
  0x7c   : > { %876 = vrot.lane.b32.xlu0 %v1431_v44, %s1566_s24 }
  0x7e   : > { %1051 = vrot.lane.b32.xlu1 %v1470_v46, %s1574_s5 }
  0x80   : > { %890 = vrot.lane.b32.xlu0 %v1435_v2, %s1562_s20 }
  0x82   : > { %951 = vrot.lane.b32.xlu1 %v1447_v17, %s1567_s25 }
  0x84   : > { %903 = vrot.lane.b32.xlu0 %v1439_v13, %s1568_s26 }
  0x86   : > { %v851_v28 = vpop.permute.xlu1 %850  ;;  %978 = vrot.lane.b32.xlu1 %v1455_v4, %s1570_s28 }
  0x88   : > { %931 = vrot.lane.b32.xlu0 %v1443_v32, %s1563_s21 }
  0x89   : > { %v810_v49 = vpop.permute.xlu0 %809 }
  0x8a   : > { %v885_v20 = vpop.permute.xlu1 %884  ;;  %1026 = vrot.lane.b32.xlu1 %v1463_v60, %s1572_s30 }
  0x8c   : > { %965 = vrot.lane.b32.xlu0 %v1451_v29, %s1569_s27 }
  0x8e   : > { %1053 = vrot.lane.b32.xlu1 %v1471_v21, %s1574_s5  ;;  %v926_v26 = vpop.permute.xlu1 %925 }
  0x90   : > { %1006 = vrot.lane.b32.xlu0 %v1459_v12, %s1571_s29 }
  0x94   : > { %1040 = vrot.lane.b32.xlu0 %v1467_v33, %s1573_s4  ;;  %v823_v40 = vpop.permute.xlu1 %822 }
  0x96   : > { %v796_v22 = vpop.permute.xlu0 %795 }
  0x97   : > { %v1058_v8 = vsel %vm1055_vm4, %v1408_v31, %v796_v22 }
  0x98   : > { %v1070_v9 = vsel %vm1068_vm5, %v1058_v8, %v810_v49 }
  0x99   : > { %v1079_v36 = vsel %vm1077_vm6, %v1070_v9, %v823_v40 }
  0x9a   : > { %v871_v34 = vpop.permute.xlu0 %870  ;;  %v1088_v35 = vsel %vm1086_vm7, %v1079_v36, %v851_v28 }
  0x9b   : > { %v1097_v39 = vsel %vm1095_vm8, %v1088_v35, %v871_v34 }
  0x9c   : > { %v946_v3 = vpop.permute.xlu1 %945  ;;  %v1106_v38 = vsel %vm1104_vm9, %v1097_v39, %v885_v20 }
  0x9e   : > { %v898_v27 = vpop.permute.xlu0 %897 }
  0x9f   : > { %v1115_v55 = vsel %vm1113_vm10, %v1106_v38, %v898_v27 }
  0xa0   : > { %v960_v37 = vpop.permute.xlu1 %959  ;;  %v1124_v48 = vsel %vm1122_vm11, %v1115_v55, %v926_v26 }
  0xa1   : > { %v1133_v56 = vsel %vm1131_vm12, %v1124_v48, %v946_v3 }
  0xa2   : > { %v798_v30 = vpop.permute.xlu0 %797  ;;  %v1142_v46 = vsel %vm1140_vm13, %v1133_v56, %v960_v37  ;;  %v1410_v37 = vcombine.low %v1693_v43, %v1765_v58 }
  0xa3   : > { %v1061_v60 = vsel %vm1055_vm4, %v1409_v23, %v798_v30 }
  0xa4   : > { %v973_v10 = vpop.permute.xlu1 %972 }
  0xa5   : > { %v1151_v59 = vsel %vm1149_vm14, %v1142_v46, %v973_v10 }
  0xa6   : > { %v812_v47 = vpop.permute.xlu0 %811 }
  0xa7   : > { %v1072_v16 = vsel %vm1068_vm5, %v1061_v60, %v812_v47 }
  0xa8   : > { %v1001_v41 = vpop.permute.xlu1 %1000 }
  0xa9   : > { %v1160_v6 = vsel %vm1158_vm15, %v1151_v59, %v1001_v41 }
  0xaa   : > { %v825_v50 = vpop.permute.xlu0 %824 }
  0xab   : > { %v1081_v20 = vsel %vm1077_vm6, %v1072_v16, %v825_v50 }
  0xac   : > { %v1021_v44 = vpop.permute.xlu1 %1020 }
  0xad   : > { %v1169_v61 = vsel %vm1167_vm0, %v1160_v6, %v1021_v44 }
  0xae   : > { %v853_v5 = vpop.permute.xlu0 %852 }
  0xaf   : > { %v1090_v21 = vsel %vm1086_vm7, %v1081_v20, %v853_v5 }
  0xb0   : > { %v1035_v57 = vpop.permute.xlu1 %1034 }
  0xb1   : > { %v1178_v62 = vsel %vm1176_vm1, %v1169_v61, %v1035_v57 }
  0xb2   : > { %v873_v42 = vpop.permute.xlu0 %872 }
  0xb3   : > { %v1099_v49 = vsel %vm1095_vm8, %v1090_v21, %v873_v42 }
  0xb4   : > { %v1048_v52 = vpop.permute.xlu1 %1047 }
  0xb5   : > { %v1187_v2 = vsel %vm1185_vm2, %v1178_v62, %v1048_v52 }
  0xb6   : > { %v887_v0 = vpop.permute.xlu0 %886  ;;  %v1199_v1 = vsel %vm1195_vm3, %v1187_v2, 0 }
  0xb7   : > { %1481 = vmatpush3.bf16.xpose.msra.mxu0 %v1199_v1  ;;  %v1108_v33 = vsel %vm1104_vm9, %v1099_v49, %v887_v0 }
  0xb8   : > { %v800_v17 = vpop.permute.xlu1 %799  ;;  %1482 = vmatprep.subr.bf16.mxu0 %v1575_v19 }
  0xb9   : > { %v1064_v47 = vsel %vm1055_vm4, %v1410_v37, %v800_v17 }
  0xba   : > { %v900_v14 = vpop.permute.xlu0 %899 }
  0xbb   : > { %v1117_v54 = vsel %vm1113_vm10, %v1108_v33, %v900_v14 }
  0xbc   : > { %v814_v24 = vpop.permute.xlu1 %813 }
  0xbd   : > { %v1074_v41 = vsel %vm1068_vm5, %v1064_v47, %v814_v24 }
  0xbe   : > { %v928_v7 = vpop.permute.xlu0 %927 }
  0xbf   : > { %v1126_v25 = vsel %vm1122_vm11, %v1117_v54, %v928_v7 }
  0xc0   : > { %v827_v53 = vpop.permute.xlu1 %826 }
  0xc1   : > { %v1083_v44 = vsel %vm1077_vm6, %v1074_v41, %v827_v53 }
  0xc2   : > { %v948_v11 = vpop.permute.xlu0 %947 }
  0xc3   : > { %v1135_v22 = vsel %vm1131_vm12, %v1126_v25, %v948_v11 }
  0xc4   : > { %v855_v13 = vpop.permute.xlu1 %854 }
  0xc5   : > { %v1092_v43 = vsel %vm1086_vm7, %v1083_v44, %v855_v13 }
  0xc6   : > { %v962_v4 = vpop.permute.xlu0 %961 }
  0xc7   : > { %v1144_v40 = vsel %vm1140_vm13, %v1135_v22, %v962_v4 }
  0xc8   : > { %v875_v45 = vpop.permute.xlu1 %874 }
  0xc9   : > { %v1101_v56 = vsel %vm1095_vm8, %v1092_v43, %v875_v45 }
  0xca   : > { %v975_v32 = vpop.permute.xlu0 %974 }
  0xcb   : > { %v1153_v9 = vsel %vm1149_vm14, %v1144_v40, %v975_v32  ;;  %v1194_v40 = vld [vmem:[%s2177_s1] sm:$0xf] }
  0xcc   : > { %v889_v28 = vpop.permute.xlu1 %888 }
  0xcd   : > { %v1110_v5 = vsel %vm1104_vm9, %v1101_v56, %v889_v28 }
  0xce   : > { %v1003_v29 = vpop.permute.xlu0 %1002 }
  0xcf   : > { %v1162_v34 = vsel %vm1158_vm15, %v1153_v9, %v1003_v29 }
  0xd0   : > { %v902_v12 = vpop.permute.xlu1 %901 }
  0xd1   : > { %v1119_v57 = vsel %vm1113_vm10, %v1110_v5, %v902_v12 }
  0xd2   : > { %v1023_v26 = vpop.permute.xlu0 %1022 }
  0xd3   : > { %v1171_v3 = vsel %vm1167_vm0, %v1162_v34, %v1023_v26 }
  0xd4   : > { %v930_v31 = vpop.permute.xlu1 %929 }
  0xd5   : > { %v1128_v59 = vsel %vm1122_vm11, %v1119_v57, %v930_v31 }
  0xd6   : > { %v1037_v8 = vpop.permute.xlu0 %1036 }
  0xd7   : > { %v1180_v35 = vsel %vm1176_vm1, %v1171_v3, %v1037_v8 }
  0xd8   : > { %v950_v36 = vpop.permute.xlu1 %949 }
  0xd9   : > { %v1137_v42 = vsel %vm1131_vm12, %v1128_v59, %v950_v36 }
  0xda   : > { %v1050_v27 = vpop.permute.xlu0 %1049 }
  0xdb   : > { %v1189_v39 = vsel %vm1185_vm2, %v1180_v35, %v1050_v27 }
  0xdc   : > { %v964_v30 = vpop.permute.xlu1 %963  ;;  %v1201_v38 = vsel %vm1195_vm3, %v1189_v39, 0 }
  0xdd   : > { %1483 = vmatpush3.bf16.xpose.msra.mxu0 %v1201_v38  ;;  %v1146_v61 = vsel %vm1140_vm13, %v1137_v42, %v964_v30 }
  0xde   : > { %v802_v10 = vpop.permute.xlu0 %801  ;;  %1484 = vmatprep.subr.bf16.mxu0 %v1575_v19 }
  0xdf   : > { %v1067_v11 = vsel %vm1055_vm4, %v1411_v51, %v802_v10  ;;  %vm1248_vm4 = vcmask 519168  }
  0xe0   : > { %v977_v55 = vpop.permute.xlu1 %976 }
  0xe1   : > { %v1155_v52 = vsel %vm1149_vm14, %v1146_v61, %v977_v55 }
  0xe2   : > { %v816_v48 = vpop.permute.xlu0 %815 }
  0xe3   : > { %v1076_v4 = vsel %vm1068_vm5, %v1067_v11, %v816_v48  ;;  %vm1258_vm5 = vcmask 7168  }
  0xe4   : > { %v1005_v50 = vpop.permute.xlu1 %1004 }
  0xe5   : > { %v1164_v2 = vsel %vm1158_vm15, %v1155_v52, %v1005_v50 }
  0xe6   : > { %v829_v58 = vpop.permute.xlu0 %828 }
  0xe7   : > { %v1085_v45 = vsel %vm1077_vm6, %v1076_v4, %v829_v58  ;;  %vm1260_vm6 = vcmask 15360  }
  0xe8   : > { %v1025_v46 = vpop.permute.xlu1 %1024 }
  0xe9   : > { %v1173_v1 = vsel %vm1167_vm0, %v1164_v2, %v1025_v46 }
  0xea   : > { %v857_v6 = vpop.permute.xlu0 %856 }
  0xeb   : > { %v1094_v23 = vsel %vm1086_vm7, %v1085_v45, %v857_v6 }
  0xec   : > { %v1039_v62 = vpop.permute.xlu1 %1038 }
  0xed   : > { %v1182_v17 = vsel %vm1176_vm1, %v1173_v1, %v1039_v62 }
  0xee   : > { %v877_v0 = vpop.permute.xlu0 %876 }
  0xef   : > { %v1103_v32 = vsel %vm1095_vm8, %v1094_v23, %v877_v0 }
  0xf0   : > { %v1052_v14 = vpop.permute.xlu1 %1051 }
  0xf1   : > { %v1191_v24 = vsel %vm1185_vm2, %v1182_v17, %v1052_v14 }
  0xf2   : > { %v891_v7 = vpop.permute.xlu0 %890  ;;  %v1203_v53 = vsel %vm1195_vm3, %v1191_v24, 0 }
  0xf3   : > { %1485 = vmatpush3.bf16.xpose.msra.mxu0 %v1203_v53  ;;  %v1112_v28 = vsel %vm1104_vm9, %v1103_v32, %v891_v7 }
  0xf4   : > { %v952_v13 = vpop.permute.xlu1 %951  ;;  %1486 = vmatprep.subr.bf16.mxu0 %v1575_v19 }
  0xf6   : > { %v904_v15 = vpop.permute.xlu0 %903 }
  0xf7   : > { %v1121_v16 = vsel %vm1113_vm10, %v1112_v28, %v904_v15 }
  0xf8   : > { %v979_v60 = vpop.permute.xlu1 %978 }
  0xfa   : > { %v932_v18 = vpop.permute.xlu0 %931 }
  0xfb   : > { %v1130_v63 = vsel %vm1122_vm11, %v1121_v16, %v932_v18 }
  0xfc   : > { %v1139_v51 = vsel %vm1131_vm12, %v1130_v63, %v952_v13  ;;  %v1027_v20 = vpop.permute.xlu1 %1026 }
  0xfe   : > { %v966_v19 = vpop.permute.xlu0 %965 }
  0xff   : > { %v1148_v29 = vsel %vm1140_vm13, %v1139_v51, %v966_v19 }
 0x100   : > { %v1157_v21 = vsel %vm1149_vm14, %v1148_v29, %v979_v60  ;;  %v1054_v33 = vpop.permute.xlu1 %1053 }
 0x102   : > { %v1007_v12 = vpop.permute.xlu0 %1006 }
 0x103   : > { %v1166_v49 = vsel %vm1158_vm15, %v1157_v21, %v1007_v12 }
 0x104   : > { %v1175_v26 = vsel %vm1167_vm0, %v1166_v49, %v1027_v20 }
 0x106   : > { %v1041_v54 = vpop.permute.xlu0 %1040 }
 0x107   : > { %v1184_v25 = vsel %vm1176_vm1, %v1175_v26, %v1041_v54 }
 0x108   : > { %v1193_v31 = vsel %vm1185_vm2, %v1184_v25, %v1054_v33 }
 0x109   : > { %v1205_v22 = vsel %vm1195_vm3, %v1193_v31, 0 }
 0x10a   : > { %1487 = vmatpush3.bf16.xpose.msra.mxu0 %v1205_v22 }
 0x111   : > { %1489 = vmatmul.mubr.msk.bf16.vlgmr.msra.gmra.mrb[0].mxu0 %vm1195_vm3, %v1194_v40 }
 0x1e4   : > { %v1241_v8 = vpop.f32.mrb[0].mxu0 }
 0x1e5   : > { %v1247_v9 = vpack.c.bf16 %v1241_v8, %v1241_v8  ;;  %v1490_v34 = vpop.f32.mrb[1].mxu0 }
 0x1e6   : > { %v1244_v36 = vpop.f32.mrb[2].mxu0 }
 0x1e7   : > { %1249 = vst.msk [vmem:[%s175_s11] sm:$0xf] %vm1248_vm4, %v1247_v9  ;;  %v1491_v3 = vpop.f32.mrb[3].mxu0  ;;  %v1250_v35 = vunpack.c.l.bf16 %v1247_v9 }
 0x1e9   : > { %v1251_v27 = vsel %vm1195_vm3, %v1250_v35, 0.0  ;;  %v1254_v37 = vmul.f32 %v1250_v35, %v1250_v35 }
 0x1ea   : > { %1252 = vadd.xlane.f32.xlu0 %v1251_v27 }
 0x1eb   : > { %v1255_v39 = vsel %vm1195_vm3, %v1254_v37, 0.0 }
 0x1ec   : > { %1256 = vadd.xlane.f32.xlu1 %v1255_v39 }
 0x277   : > { %v1253_v30 = vpop.xlane.xlu0 %1252 }
 0x279   : > { %v1257_v38 = vpop.xlane.xlu1 %1256 }
 0x27a   : > { %v1259_v10 = vsel %vm1258_vm5, %v1253_v30, %v1257_v38 }
 0x27b   : > { %1261 = vst.msk [vmem:[%s179_s17] sm:$0xff] %vm1260_vm6, %v1259_v10 }
 0x27c PF: > { %s14_s12 = sadd.s32 1, %s1558_s12  }
 0x27d   : > { %p11_p4 = scmp.ge.s32.totalorder %s14_s12, 4  }
 0x27f   :  { %13 = sbr.rel (!%p11_p4) target bundleno = 1 (0x1), region = 73 }

</bundles_post_ra>
